<compile_context>
chip_gen: v7x
topology: tpu7x:2x2x1
jax: 0.10.0
libtpu: 0.0.40
codegen_flags: <defaults>
</compile_context>

<pallas_src>
import functools
import math

import numpy as np
import jax
import jax.numpy as jnp
from jax import lax
from jax.experimental import pallas as pl
from jax.experimental.pallas import tpu as pltpu


# ---------------------------------------------------------------------------
# Kernel
# ---------------------------------------------------------------------------
def _layer_norm(v, gamma, beta, eps=1e-5):
    mu = jnp.mean(v, axis=-1, keepdims=True)
    c = v - mu
    var = jnp.mean(c * c, axis=-1, keepdims=True)
    return c * lax.rsqrt(var + eps) * gamma + beta


def _decoder_block_kernel(*refs, head_num, causal, dropout_rate, train, seed):
    if causal:
        (x_ref, y_ref,
         wqkv1_ref, bqkv1_ref, wo1_ref,
         wq2_ref, bq2_ref, wkv2_ref, bkv2_ref, wo2_ref,
         wf1_ref, bf1_ref, wf2_ref, bf2_ref, ln_ref,
         out_ref) = refs
        mask_ref = None
    else:
        (x_ref, y_ref, mask_ref,
         wqkv1_ref, bqkv1_ref, wo1_ref,
         wq2_ref, bq2_ref, wkv2_ref, bkv2_ref, wo2_ref,
         wf1_ref, bf1_ref, wf2_ref, bf2_ref, ln_ref,
         out_ref) = refs

    f32, bf16 = jnp.float32, jnp.bfloat16

    x = x_ref[0]            # (S,  D)  bf16
    y = y_ref[0]            # (S2, D)  bf16
    x_f32 = x.astype(f32)

    S, D = x.shape
    H = head_num
    dh = D // H
    scale = 1.0 / math.sqrt(dh)

    use_dropout = bool(train) and dropout_rate > 0.0
    if use_dropout:
        # Per-grid-step reseed -> iterations independent -> "parallel" grid stays safe.
        pltpu.prng_seed(seed + pl.program_id(0))
        keep_scale = 1.0 / (1.0 - dropout_rate)
        thresh = np.uint32(min(int(dropout_rate * (2 ** 32)), 2 ** 32 - 1))

    def dropout(v):
        # TODO(synk): uses the TPU hardware PRNG; cannot bit-match torch RNG masks.
        if not use_dropout:
            return v
        bits = pltpu.bitcast(pltpu.prng_random_bits(v.shape), jnp.uint32)
        keep = (bits >= thresh).astype(v.dtype) * keep_scale
        return v * keep

    def split_heads(m2d):
        # (S_, D) f32 -> (H, S_, dh) bf16; heads occupy contiguous lane windows.
        m2d = m2d.astype(bf16)
        return jnp.stack([m2d[:, h * dh:(h + 1) * dh] for h in range(H)], axis=0)

    def merge_heads(m3d):
        # (H, S_, dh) f32 -> (S_, D)   (== torch concat_head)
        return jnp.concatenate([m3d[h] for h in range(H)], axis=-1)

    def attention(q2d, k2d, v2d, attn_mask):
        # q2d (Sq, D) already scaled; k2d/v2d (Sk, D); all f32 coming in.
        q3 = split_heads(q2d)                     # (H, Sq, dh) bf16
        k3 = split_heads(k2d)                     # (H, Sk, dh) bf16
        v3 = split_heads(v2d)                     # (H, Sk, dh) bf16
        # Head-batched score matmul (leading batch dim, no explicit transpose).
        s = jnp.einsum('hqd,hkd->hqk', q3, k3,
                       preferred_element_type=f32)           # (H, Sq, Sk) f32
        if attn_mask is not None:
            s = s + attn_mask                                 # broadcast over heads
        s = s - jnp.max(s, axis=-1, keepdims=True)
        p = jnp.exp(s)
        p = p * pl.reciprocal(jnp.sum(p, axis=-1, keepdims=True), approx=True)
        p = dropout(p)                                        # MHA internal dropout
        ctx = jnp.einsum('hqk,hkd->hqd', p.astype(bf16), v3,
                         preferred_element_type=f32)          # (H, Sq, dh) f32
        return merge_heads(ctx)                               # (Sq, D) f32

    # ---- masked multi-head self-attention + residual + LN1 ----
    qkv = jnp.dot(x, wqkv1_ref[...], preferred_element_type=f32) + bqkv1_ref[...]
    if causal:
        row = lax.broadcasted_iota(jnp.int32, (S, S), 0)
        col = lax.broadcasted_iota(jnp.int32, (S, S), 1)
        mask = jnp.where(row >= col, 0.0, -1e9)               # additive causal mask
    else:
        mask = mask_ref[...]
    sa = attention(qkv[:, :D] * scale, qkv[:, D:2 * D], qkv[:, 2 * D:], mask)
    sa = jnp.dot(sa.astype(bf16), wo1_ref[...], preferred_element_type=f32)
    sa = dropout(sa)                                          # dropout_1
    x1 = _layer_norm(sa + x_f32, ln_ref[0:1, :], ln_ref[1:2, :])

    # ---- cross multi-head attention (K, V from encoder output) + residual + LN2 ----
    qc = jnp.dot(x1.astype(bf16), wq2_ref[...], preferred_element_type=f32) + bq2_ref[...]
    kv = jnp.dot(y, wkv2_ref[...], preferred_element_type=f32) + bkv2_ref[...]
    ca = attention(qc * scale, kv[:, :D], kv[:, D:], None)
    ca = jnp.dot(ca.astype(bf16), wo2_ref[...], preferred_element_type=f32)
    ca = dropout(ca)                                          # dropout_2
    x2 = _layer_norm(ca + x1, ln_ref[2:3, :], ln_ref[3:4, :])

    # ---- feed-forward + residual + LN3 ----
    h1 = jnp.dot(x2.astype(bf16), wf1_ref[...], preferred_element_type=f32) + bf1_ref[...]
    h1 = jnp.maximum(h1, 0.0)
    h1 = dropout(h1)                                          # FF internal dropout
    ff = jnp.dot(h1.astype(bf16), wf2_ref[...], preferred_element_type=f32) + bf2_ref[...]
    ff = dropout(ff)                                          # dropout_3
    out = _layer_norm(ff + x2, ln_ref[4:5, :], ln_ref[5:6, :])

    out_ref[0] = out.astype(out_ref.dtype)


# ---------------------------------------------------------------------------
# Wrapper
# ---------------------------------------------------------------------------
def decoder_block(x, y, mask, params, *, head_num, dropout_rate=0.1, train=False,
                  seed=0, causal=False, out_dtype=jnp.bfloat16):
    """DecoderBlock forward. x:[B,S,D], y:[B,S2,D]. If causal=True the additive
    causal mask is generated in-kernel and `mask` is ignored; otherwise `mask`
    must be an additive [S,S] mask (or None via causal=False + zeros)."""
    B, S, D = x.shape
    _, S2, _ = y.shape
    dff = params["wf1"].shape[1]
    f32, bf16 = jnp.float32, jnp.bfloat16

    # Fused Q/K/V (and K/V) projection weights -> one matmul in-kernel, bf16 operands.
    wqkv1 = jnp.concatenate([params["wq1"], params["wk1"], params["wv1"]], axis=1).astype(bf16)
    bqkv1 = jnp.concatenate([params["bq1"], params["bk1"], params["bv1"]]).reshape(1, 3 * D).astype(f32)
    wkv2 = jnp.concatenate([params["wk2"], params["wv2"]], axis=1).astype(bf16)
    bkv2 = jnp.concatenate([params["bk2"], params["bv2"]]).reshape(1, 2 * D).astype(f32)
    wo1 = params["wo1"].astype(bf16)
    wq2 = params["wq2"].astype(bf16)
    bq2 = params["bq2"].reshape(1, D).astype(f32)
    wo2 = params["wo2"].astype(bf16)
    wf1 = params["wf1"].astype(bf16)
    bf1 = params["bf1"].reshape(1, dff).astype(f32)
    wf2 = params["wf2"].astype(bf16)
    bf2 = params["bf2"].reshape(1, D).astype(f32)
    ln = jnp.stack([params["ln1_g"], params["ln1_b"],
                    params["ln2_g"], params["ln2_b"],
                    params["ln3_g"], params["ln3_b"]], axis=0).astype(f32)

    kernel = functools.partial(
        _decoder_block_kernel,
        head_num=head_num, causal=causal, dropout_rate=dropout_rate,
        train=train, seed=seed)

    def const_spec(shape):
        # Weights/biases: constant index map -> resident in VMEM across grid steps.
        return pl.BlockSpec(shape, lambda b: (0, 0))

    weight_specs = [
        const_spec((D, 3 * D)), const_spec((1, 3 * D)),      # fused QKV of MMHA
        const_spec((D, D)),                                   # Wo1
        const_spec((D, D)), const_spec((1, D)),               # Wq2, bq2
        const_spec((D, 2 * D)), const_spec((1, 2 * D)),       # fused KV of MHA
        const_spec((D, D)),                                   # Wo2
        const_spec((D, dff)), const_spec((1, dff)),           # FF linear_1
        const_spec((dff, D)), const_spec((1, D)),             # FF linear_2
        const_spec((6, D)),                                   # packed LayerNorm params
    ]
    weight_args = [wqkv1, bqkv1, wo1, wq2, bq2, wkv2, bkv2, wo2, wf1, bf1, wf2, bf2, ln]

    in_specs = [
        pl.BlockSpec((1, S, D), lambda b: (b, 0, 0)),         # x tile (whole sequence)
        pl.BlockSpec((1, S2, D), lambda b: (b, 0, 0)),        # y tile (whole sequence)
    ]
    args = [x.astype(bf16), y.astype(bf16)]
    if not causal:
        in_specs.append(const_spec((S, S)))                   # explicit additive mask
        args.append(mask.astype(f32))
    in_specs += weight_specs
    args += weight_args

    # Explicit scoped-VMEM budget: double-buffered residents + activation working set.
    resident = sum(int(a.size) * a.dtype.itemsize for a in weight_args)
    tiles = (S * D + S2 * D + S * D) * 2                      # x / y / out bf16 tiles
    acts = 4 * (S * 3 * D + S2 * 2 * D + head_num * S * max(S, S2) + S * dff + 4 * S * D)
    vmem_limit = int(min(max(2 * (resident + tiles) + 4 * acts + (8 << 20), 32 << 20),
                         64 << 20))

    out = pl.pallas_call(
        kernel,
        out_shape=jax.ShapeDtypeStruct((B, S, D), out_dtype),
        grid_spec=pltpu.PrefetchScalarGridSpec(
            num_scalar_prefetch=0,
            grid=(B,),                                        # one grid step per batch element
            in_specs=in_specs,
            out_specs=pl.BlockSpec((1, S, D), lambda b: (b, 0, 0)),
        ),
        compiler_params=pltpu.CompilerParams(
            dimension_semantics=("parallel",),                # batch axis shardable (v7x 2 TCs)
            vmem_limit_bytes=vmem_limit,
        ),
    )(*args)
    return out


# ---------------------------------------------------------------------------
# Pure-JAX reference (eval-mode DecoderBlock forward, f32 / HIGHEST precision)
# ---------------------------------------------------------------------------
def _reference(x, y, mask, p, head_num):
    HI = lax.Precision.HIGHEST

    def linear(v, w, b=None):
        o = jnp.dot(v, w, precision=HI)
        return o + b if b is not None else o

    def layer_norm(v, g, b, eps=1e-5):
        mu = jnp.mean(v, axis=-1, keepdims=True)
        c = v - mu
        var = jnp.mean(c * c, axis=-1, keepdims=True)
        return c * lax.rsqrt(var + eps) * g + b

    def mha(q_in, k_in, v_in, wq, bq, wk, bk, wv, bv, wo, attn_mask=None):
        Q, K, V = linear(q_in, wq, bq), linear(k_in, wk, bk), linear(v_in, wv, bv)
        D = Q.shape[-1]
        dh = D // head_num
        outs = []
        for h in range(head_num):
            sl = slice(h * dh, (h + 1) * dh)
            s = jnp.einsum("bqd,bkd->bqk", Q[..., sl], K[..., sl], precision=HI) / math.sqrt(dh)
            if attn_mask is not None:
                s = s + attn_mask
            pr = jax.nn.softmax(s, axis=-1)
            outs.append(jnp.einsum("bqk,bkd->bqd", pr, V[..., sl], precision=HI))
        return linear(jnp.concatenate(outs, axis=-1), wo)

    sa = mha(x, x, x, p["wq1"], p["bq1"], p["wk1"], p["bk1"], p["wv1"], p["bv1"], p["wo1"], mask)
    x1 = layer_norm(sa + x, p["ln1_g"], p["ln1_b"])
    ca = mha(x1, y, y, p["wq2"], p["bq2"], p["wk2"], p["bk2"], p["wv2"], p["bv2"], p["wo2"])
    x2 = layer_norm(ca + x1, p["ln2_g"], p["ln2_b"])
    h = jax.nn.relu(linear(x2, p["wf1"], p["bf1"]))
    ff = linear(h, p["wf2"], p["bf2"])
    return layer_norm(ff + x2, p["ln3_g"], p["ln3_b"])


# ---------------------------------------------------------------------------
# Demo / self-check
# ---------------------------------------------------------------------------
if __name__ == "__main__":
    B, S, S_ENC = 2, 8, 16
    D, H, DFF = 32, 4, 64
    DROPOUT = 0.1

    key = jax.random.PRNGKey(0)
    keys = jax.random.split(key, 24)
    ki = iter(keys)

    def lin_init(kw, kb, fan_in, fan_out):
        bound = 1.0 / math.sqrt(fan_in)
        w = jax.random.uniform(kw, (fan_in, fan_out), jnp.float32, -bound, bound)
        b = jax.random.uniform(kb, (fan_out,), jnp.float32, -bound, bound)
        return w, b

    params = {}
    params["wq1"], params["bq1"] = lin_init(next(ki), next(ki), D, D)
    params["wk1"], params["bk1"] = lin_init(next(ki), next(ki), D, D)
    params["wv1"], params["bv1"] = lin_init(next(ki), next(ki), D, D)
    params["wo1"] = lin_init(next(ki), next(ki), D, D)[0]            # bias=False
    params["wq2"], params["bq2"] = lin_init(next(ki), next(ki), D, D)
    params["wk2"], params["bk2"] = lin_init(next(ki), next(ki), D, D)
    params["wv2"], params["bv2"] = lin_init(next(ki), next(ki), D, D)
    params["wo2"] = lin_init(next(ki), next(ki), D, D)[0]            # bias=False
    params["wf1"], params["bf1"] = lin_init(next(ki), next(ki), D, DFF)
    params["wf2"], params["bf2"] = lin_init(next(ki), next(ki), DFF, D)
    for i in (1, 2, 3):
        params[f"ln{i}_g"] = jnp.ones((D,), jnp.float32)
        params[f"ln{i}_b"] = jnp.zeros((D,), jnp.float32)

    kx, ky = jax.random.split(next(ki))
    x = jax.random.normal(kx, (B, S, D), jnp.float32)
    y = jax.random.normal(ky, (B, S_ENC, D), jnp.float32)
    # Causal mask only needed host-side for the reference; the kernel builds it via iota.
    causal_mask = jnp.where(jnp.arange(S)[:, None] >= jnp.arange(S)[None, :],
                            0.0, -1e9).astype(jnp.float32)

    # Eval-mode forward (dropout = identity). Set train=True for stochastic inverted dropout.
    out = decoder_block(x, y, None, params, head_num=H,
                        dropout_rate=DROPOUT, train=False, seed=0, causal=True)
    out = jax.block_until_ready(out)

    ref = _reference(x, y, causal_mask, params, H)
    # bf16 operands + bf16 output => loosened tolerance vs the f32 HIGHEST-precision reference.
    np.testing.assert_allclose(np.asarray(out.astype(jnp.float32)), np.asarray(ref),
                               rtol=8e-2, atol=8e-2)
    print("KERNEL_OK")
</pallas_src>

<mosaic_0001>
module attributes {stable_mosaic.version = 11 : i64} {
  func.func @_decoder_block_kernel(%arg0: i32, %arg1: memref<1x8x32xbf16, #tpu.memory_space<vmem>>, %arg2: memref<1x16x32xbf16, #tpu.memory_space<vmem>>, %arg3: memref<32x96xbf16, #tpu.memory_space<vmem>>, %arg4: memref<1x96xf32, #tpu.memory_space<vmem>>, %arg5: memref<32x32xbf16, #tpu.memory_space<vmem>>, %arg6: memref<32x32xbf16, #tpu.memory_space<vmem>>, %arg7: memref<1x32xf32, #tpu.memory_space<vmem>>, %arg8: memref<32x64xbf16, #tpu.memory_space<vmem>>, %arg9: memref<1x64xf32, #tpu.memory_space<vmem>>, %arg10: memref<32x32xbf16, #tpu.memory_space<vmem>>, %arg11: memref<32x64xbf16, #tpu.memory_space<vmem>>, %arg12: memref<1x64xf32, #tpu.memory_space<vmem>>, %arg13: memref<64x32xbf16, #tpu.memory_space<vmem>>, %arg14: memref<1x32xf32, #tpu.memory_space<vmem>>, %arg15: memref<6x32xf32, #tpu.memory_space<vmem>>, %arg16: memref<1x8x32xbf16, #tpu.memory_space<vmem>>) attributes {dimension_semantics = [#tpu.dimension_semantics<parallel>], iteration_bounds = array<i64: 2>, scalar_prefetch = 0 : i64, scratch_operands = 0 : i64, tpu.core_type = #tpu.core_type<tc>, window_params = [{transform_indices = @transform_0, window_bounds = array<i64: 1, 8, 32>}, {transform_indices = @transform_1, window_bounds = array<i64: 1, 16, 32>}, {pipeline_mode = #tpu.pipeline_mode<synchronous>, transform_indices = @transform_2, window_bounds = array<i64: 32, 96>}, {pipeline_mode = #tpu.pipeline_mode<synchronous>, transform_indices = @transform_3, window_bounds = array<i64: 1, 96>}, {pipeline_mode = #tpu.pipeline_mode<synchronous>, transform_indices = @transform_4, window_bounds = array<i64: 32, 32>}, {pipeline_mode = #tpu.pipeline_mode<synchronous>, transform_indices = @transform_5, window_bounds = array<i64: 32, 32>}, {pipeline_mode = #tpu.pipeline_mode<synchronous>, transform_indices = @transform_6, window_bounds = array<i64: 1, 32>}, {pipeline_mode = #tpu.pipeline_mode<synchronous>, transform_indices = @transform_7, window_bounds = array<i64: 32, 64>}, {pipeline_mode = #tpu.pipeline_mode<synchronous>, transform_indices = @transform_8, window_bounds = array<i64: 1, 64>}, {pipeline_mode = #tpu.pipeline_mode<synchronous>, transform_indices = @transform_9, window_bounds = array<i64: 32, 32>}, {pipeline_mode = #tpu.pipeline_mode<synchronous>, transform_indices = @transform_10, window_bounds = array<i64: 32, 64>}, {pipeline_mode = #tpu.pipeline_mode<synchronous>, transform_indices = @transform_11, window_bounds = array<i64: 1, 64>}, {pipeline_mode = #tpu.pipeline_mode<synchronous>, transform_indices = @transform_12, window_bounds = array<i64: 64, 32>}, {pipeline_mode = #tpu.pipeline_mode<synchronous>, transform_indices = @transform_13, window_bounds = array<i64: 1, 32>}, {pipeline_mode = #tpu.pipeline_mode<synchronous>, transform_indices = @transform_14, window_bounds = array<i64: 6, 32>}, {transform_indices = @transform_15, window_bounds = array<i64: 1, 8, 32>}]} {
    %c0 = arith.constant 0 : index
    %c0_0 = arith.constant 0 : index
    %c0_1 = arith.constant 0 : index
    %0 = vector.load %arg1[%c0, %c0_0, %c0_1] : memref<1x8x32xbf16, #tpu.memory_space<vmem>>, vector<1x8x32xbf16>
    %1 = vector.shape_cast %0 : vector<1x8x32xbf16> to vector<8x32xbf16>
    %c0_2 = arith.constant 0 : index
    %c0_3 = arith.constant 0 : index
    %c0_4 = arith.constant 0 : index
    %2 = vector.load %arg2[%c0_2, %c0_3, %c0_4] : memref<1x16x32xbf16, #tpu.memory_space<vmem>>, vector<1x16x32xbf16>
    %3 = vector.shape_cast %2 : vector<1x16x32xbf16> to vector<16x32xbf16>
    %4 = arith.extf %1 : vector<8x32xbf16> to vector<8x32xf32>
    %c0_5 = arith.constant 0 : index
    %c0_6 = arith.constant 0 : index
    %5 = vector.load %arg3[%c0_5, %c0_6] : memref<32x96xbf16, #tpu.memory_space<vmem>>, vector<32x96xbf16>
    %cst = arith.constant dense<0.000000e+00> : vector<8x96xf32>
    %6 = tpu.matmul %1, %5, %cst {dimension_numbers = #tpu.dot_dimension_numbers<[1], [0], [0], [1], [0, 0, 1, 1], [], []>} : vector<8x32xbf16>, vector<32x96xbf16>, vector<8x96xf32> -> vector<8x96xf32>
    %c0_7 = arith.constant 0 : index
    %c0_8 = arith.constant 0 : index
    %7 = vector.load %arg4[%c0_7, %c0_8] : memref<1x96xf32, #tpu.memory_space<vmem>>, vector<1x96xf32>
    %8 = vector.broadcast %7 : vector<1x96xf32> to vector<8x96xf32>
    %9 = arith.addf %6, %8 : vector<8x96xf32>
    %10 = tpu.iota {dimensions = array<i32: 0>} : vector<8x8xi32>
    %11 = tpu.iota {dimensions = array<i32: 1>} : vector<8x8xi32>
    %12 = arith.cmpi sge, %10, %11 : vector<8x8xi32>
    %cst_9 = arith.constant 0.000000e+00 : f32
    %cst_10 = arith.constant -1.000000e+09 : f32
    %13 = vector.broadcast %cst_9 : f32 to vector<8x8xf32>
    %14 = vector.broadcast %cst_10 : f32 to vector<8x8xf32>
    %15 = arith.select %12, %13, %14 : vector<8x8xi1>, vector<8x8xf32>
    %16 = vector.extract_strided_slice %9 {offsets = [0, 0], sizes = [8, 32], strides = [1, 1]} : vector<8x96xf32> to vector<8x32xf32>
    %cst_11 = arith.constant 0.353553385 : f32
    %17 = vector.broadcast %cst_11 : f32 to vector<8x32xf32>
    %18 = arith.mulf %16, %17 : vector<8x32xf32>
    %19 = vector.extract_strided_slice %9 {offsets = [0, 32], sizes = [8, 32], strides = [1, 1]} : vector<8x96xf32> to vector<8x32xf32>
    %20 = vector.extract_strided_slice %9 {offsets = [0, 64], sizes = [8, 32], strides = [1, 1]} : vector<8x96xf32> to vector<8x32xf32>
    %21 = arith.truncf %18 : vector<8x32xf32> to vector<8x32xbf16>
    %22 = vector.extract_strided_slice %21 {offsets = [0, 0], sizes = [8, 8], strides = [1, 1]} : vector<8x32xbf16> to vector<8x8xbf16>
    %23 = vector.extract_strided_slice %21 {offsets = [0, 8], sizes = [8, 8], strides = [1, 1]} : vector<8x32xbf16> to vector<8x8xbf16>
    %24 = vector.extract_strided_slice %21 {offsets = [0, 16], sizes = [8, 8], strides = [1, 1]} : vector<8x32xbf16> to vector<8x8xbf16>
    %25 = vector.extract_strided_slice %21 {offsets = [0, 24], sizes = [8, 8], strides = [1, 1]} : vector<8x32xbf16> to vector<8x8xbf16>
    %26 = vector.shape_cast %22 : vector<8x8xbf16> to vector<1x8x8xbf16>
    %27 = vector.shape_cast %23 : vector<8x8xbf16> to vector<1x8x8xbf16>
    %28 = vector.shape_cast %24 : vector<8x8xbf16> to vector<1x8x8xbf16>
    %29 = vector.shape_cast %25 : vector<8x8xbf16> to vector<1x8x8xbf16>
    %30 = tpu.concatenate %26, %27, %28, %29 in 0 : vector<1x8x8xbf16>, vector<1x8x8xbf16>, vector<1x8x8xbf16>, vector<1x8x8xbf16> -> vector<4x8x8xbf16>
    %31 = arith.truncf %19 : vector<8x32xf32> to vector<8x32xbf16>
    %32 = vector.extract_strided_slice %31 {offsets = [0, 0], sizes = [8, 8], strides = [1, 1]} : vector<8x32xbf16> to vector<8x8xbf16>
    %33 = vector.extract_strided_slice %31 {offsets = [0, 8], sizes = [8, 8], strides = [1, 1]} : vector<8x32xbf16> to vector<8x8xbf16>
    %34 = vector.extract_strided_slice %31 {offsets = [0, 16], sizes = [8, 8], strides = [1, 1]} : vector<8x32xbf16> to vector<8x8xbf16>
    %35 = vector.extract_strided_slice %31 {offsets = [0, 24], sizes = [8, 8], strides = [1, 1]} : vector<8x32xbf16> to vector<8x8xbf16>
    %36 = vector.shape_cast %32 : vector<8x8xbf16> to vector<1x8x8xbf16>
    %37 = vector.shape_cast %33 : vector<8x8xbf16> to vector<1x8x8xbf16>
    %38 = vector.shape_cast %34 : vector<8x8xbf16> to vector<1x8x8xbf16>
    %39 = vector.shape_cast %35 : vector<8x8xbf16> to vector<1x8x8xbf16>
    %40 = tpu.concatenate %36, %37, %38, %39 in 0 : vector<1x8x8xbf16>, vector<1x8x8xbf16>, vector<1x8x8xbf16>, vector<1x8x8xbf16> -> vector<4x8x8xbf16>
    %41 = arith.truncf %20 : vector<8x32xf32> to vector<8x32xbf16>
    %42 = vector.extract_strided_slice %41 {offsets = [0, 0], sizes = [8, 8], strides = [1, 1]} : vector<8x32xbf16> to vector<8x8xbf16>
    %43 = vector.extract_strided_slice %41 {offsets = [0, 8], sizes = [8, 8], strides = [1, 1]} : vector<8x32xbf16> to vector<8x8xbf16>
    %44 = vector.extract_strided_slice %41 {offsets = [0, 16], sizes = [8, 8], strides = [1, 1]} : vector<8x32xbf16> to vector<8x8xbf16>
    %45 = vector.extract_strided_slice %41 {offsets = [0, 24], sizes = [8, 8], strides = [1, 1]} : vector<8x32xbf16> to vector<8x8xbf16>
    %46 = vector.shape_cast %42 : vector<8x8xbf16> to vector<1x8x8xbf16>
    %47 = vector.shape_cast %43 : vector<8x8xbf16> to vector<1x8x8xbf16>
    %48 = vector.shape_cast %44 : vector<8x8xbf16> to vector<1x8x8xbf16>
    %49 = vector.shape_cast %45 : vector<8x8xbf16> to vector<1x8x8xbf16>
    %50 = tpu.concatenate %46, %47, %48, %49 in 0 : vector<1x8x8xbf16>, vector<1x8x8xbf16>, vector<1x8x8xbf16>, vector<1x8x8xbf16> -> vector<4x8x8xbf16>
    "tpu.trace_start"() <{level = 10 : i32, message = "hqd,hkd->hqk"}> : () -> ()
    %cst_12 = arith.constant dense<0.000000e+00> : vector<4x8x8xf32>
    %51 = tpu.matmul %30, %40, %cst_12 {dimension_numbers = #tpu.dot_dimension_numbers<[2], [2], [1], [1], [0, 0, 0, 1, 1, 1], [0], [0]>} : vector<4x8x8xbf16>, vector<4x8x8xbf16>, vector<4x8x8xf32> -> vector<4x8x8xf32>
    "tpu.trace_stop"() : () -> ()
    %52 = vector.shape_cast %15 : vector<8x8xf32> to vector<1x8x8xf32>
    %53 = vector.broadcast %52 : vector<1x8x8xf32> to vector<4x8x8xf32>
    %54 = arith.addf %51, %53 : vector<4x8x8xf32>
    %cst_13 = arith.constant dense<0xFF800000> : vector<4x8xf32>
    %55 = vector.multi_reduction <maximumf>, %54, %cst_13 [2] : vector<4x8x8xf32> to vector<4x8xf32>
    %56 = vector.shape_cast %55 : vector<4x8xf32> to vector<4x8x1xf32>
    %57 = vector.broadcast %56 : vector<4x8x1xf32> to vector<4x8x8xf32>
    %58 = arith.subf %54, %57 : vector<4x8x8xf32>
    %59 = math.exp %58 : vector<4x8x8xf32>
    %cst_14 = arith.constant dense<0.000000e+00> : vector<4x8xf32>
    %60 = vector.multi_reduction <add>, %59, %cst_14 [2] : vector<4x8x8xf32> to vector<4x8xf32>
    %61 = vector.shape_cast %60 : vector<4x8xf32> to vector<4x8x1xf32>
    %62 = tpu.reciprocal %61 {approx = true} : vector<4x8x1xf32> -> vector<4x8x1xf32>
    %63 = vector.broadcast %62 : vector<4x8x1xf32> to vector<4x8x8xf32>
    %64 = arith.mulf %59, %63 : vector<4x8x8xf32>
    %65 = arith.truncf %64 : vector<4x8x8xf32> to vector<4x8x8xbf16>
    "tpu.trace_start"() <{level = 10 : i32, message = "hqk,hkd->hqd"}> : () -> ()
    %cst_15 = arith.constant dense<0.000000e+00> : vector<4x8x8xf32>
    %66 = tpu.matmul %65, %50, %cst_15 {dimension_numbers = #tpu.dot_dimension_numbers<[2], [1], [1], [2], [0, 0, 0, 1, 1, 2], [0], [0]>} : vector<4x8x8xbf16>, vector<4x8x8xbf16>, vector<4x8x8xf32> -> vector<4x8x8xf32>
    "tpu.trace_stop"() : () -> ()
    %67 = vector.extract_strided_slice %66 {offsets = [0, 0, 0], sizes = [1, 8, 8], strides = [1, 1, 1]} : vector<4x8x8xf32> to vector<1x8x8xf32>
    %68 = vector.shape_cast %67 : vector<1x8x8xf32> to vector<8x8xf32>
    %69 = vector.extract_strided_slice %66 {offsets = [1, 0, 0], sizes = [1, 8, 8], strides = [1, 1, 1]} : vector<4x8x8xf32> to vector<1x8x8xf32>
    %70 = vector.shape_cast %69 : vector<1x8x8xf32> to vector<8x8xf32>
    %71 = vector.extract_strided_slice %66 {offsets = [2, 0, 0], sizes = [1, 8, 8], strides = [1, 1, 1]} : vector<4x8x8xf32> to vector<1x8x8xf32>
    %72 = vector.shape_cast %71 : vector<1x8x8xf32> to vector<8x8xf32>
    %73 = vector.extract_strided_slice %66 {offsets = [3, 0, 0], sizes = [1, 8, 8], strides = [1, 1, 1]} : vector<4x8x8xf32> to vector<1x8x8xf32>
    %74 = vector.shape_cast %73 : vector<1x8x8xf32> to vector<8x8xf32>
    %75 = tpu.concatenate %68, %70, %72, %74 in 1 : vector<8x8xf32>, vector<8x8xf32>, vector<8x8xf32>, vector<8x8xf32> -> vector<8x32xf32>
    %76 = arith.truncf %75 : vector<8x32xf32> to vector<8x32xbf16>
    %c0_16 = arith.constant 0 : index
    %c0_17 = arith.constant 0 : index
    %77 = vector.load %arg5[%c0_16, %c0_17] : memref<32x32xbf16, #tpu.memory_space<vmem>>, vector<32x32xbf16>
    %cst_18 = arith.constant dense<0.000000e+00> : vector<8x32xf32>
    %78 = tpu.matmul %76, %77, %cst_18 {dimension_numbers = #tpu.dot_dimension_numbers<[1], [0], [0], [1], [0, 0, 1, 1], [], []>} : vector<8x32xbf16>, vector<32x32xbf16>, vector<8x32xf32> -> vector<8x32xf32>
    %79 = arith.addf %78, %4 : vector<8x32xf32>
    %c0_19 = arith.constant 0 : index
    %c0_20 = arith.constant 0 : index
    %80 = vector.load %arg15[%c0_19, %c0_20] : memref<6x32xf32, #tpu.memory_space<vmem>>, vector<1x32xf32>
    %c1 = arith.constant 1 : index
    %c0_21 = arith.constant 0 : index
    %81 = vector.load %arg15[%c1, %c0_21] : memref<6x32xf32, #tpu.memory_space<vmem>>, vector<1x32xf32>
    %cst_22 = arith.constant dense<0.000000e+00> : vector<8xf32>
    %82 = vector.multi_reduction <add>, %79, %cst_22 [1] : vector<8x32xf32> to vector<8xf32>
    %83 = vector.shape_cast %82 : vector<8xf32> to vector<8x1xf32>
    %cst_23 = arith.constant 3.200000e+01 : f32
    %84 = vector.broadcast %cst_23 : f32 to vector<8x1xf32>
    %85 = arith.divf %83, %84 : vector<8x1xf32>
    %86 = vector.broadcast %85 : vector<8x1xf32> to vector<8x32xf32>
    %87 = arith.subf %79, %86 : vector<8x32xf32>
    %88 = arith.mulf %87, %87 : vector<8x32xf32>
    %cst_24 = arith.constant dense<0.000000e+00> : vector<8xf32>
    %89 = vector.multi_reduction <add>, %88, %cst_24 [1] : vector<8x32xf32> to vector<8xf32>
    %90 = vector.shape_cast %89 : vector<8xf32> to vector<8x1xf32>
    %cst_25 = arith.constant 3.200000e+01 : f32
    %91 = vector.broadcast %cst_25 : f32 to vector<8x1xf32>
    %92 = arith.divf %90, %91 : vector<8x1xf32>
    %cst_26 = arith.constant 9.99999974E-6 : f32
    %93 = vector.broadcast %cst_26 : f32 to vector<8x1xf32>
    %94 = arith.addf %92, %93 : vector<8x1xf32>
    %95 = math.rsqrt %94 : vector<8x1xf32>
    %96 = vector.broadcast %95 : vector<8x1xf32> to vector<8x32xf32>
    %97 = arith.mulf %87, %96 : vector<8x32xf32>
    %98 = vector.broadcast %80 : vector<1x32xf32> to vector<8x32xf32>
    %99 = arith.mulf %97, %98 : vector<8x32xf32>
    %100 = vector.broadcast %81 : vector<1x32xf32> to vector<8x32xf32>
    %101 = arith.addf %99, %100 : vector<8x32xf32>
    %102 = arith.truncf %101 : vector<8x32xf32> to vector<8x32xbf16>
    %c0_27 = arith.constant 0 : index
    %c0_28 = arith.constant 0 : index
    %103 = vector.load %arg6[%c0_27, %c0_28] : memref<32x32xbf16, #tpu.memory_space<vmem>>, vector<32x32xbf16>
    %cst_29 = arith.constant dense<0.000000e+00> : vector<8x32xf32>
    %104 = tpu.matmul %102, %103, %cst_29 {dimension_numbers = #tpu.dot_dimension_numbers<[1], [0], [0], [1], [0, 0, 1, 1], [], []>} : vector<8x32xbf16>, vector<32x32xbf16>, vector<8x32xf32> -> vector<8x32xf32>
    %c0_30 = arith.constant 0 : index
    %c0_31 = arith.constant 0 : index
    %105 = vector.load %arg7[%c0_30, %c0_31] : memref<1x32xf32, #tpu.memory_space<vmem>>, vector<1x32xf32>
    %106 = vector.broadcast %105 : vector<1x32xf32> to vector<8x32xf32>
    %107 = arith.addf %104, %106 : vector<8x32xf32>
    %c0_32 = arith.constant 0 : index
    %c0_33 = arith.constant 0 : index
    %108 = vector.load %arg8[%c0_32, %c0_33] : memref<32x64xbf16, #tpu.memory_space<vmem>>, vector<32x64xbf16>
    %cst_34 = arith.constant dense<0.000000e+00> : vector<16x64xf32>
    %109 = tpu.matmul %3, %108, %cst_34 {dimension_numbers = #tpu.dot_dimension_numbers<[1], [0], [0], [1], [0, 0, 1, 1], [], []>} : vector<16x32xbf16>, vector<32x64xbf16>, vector<16x64xf32> -> vector<16x64xf32>
    %c0_35 = arith.constant 0 : index
    %c0_36 = arith.constant 0 : index
    %110 = vector.load %arg9[%c0_35, %c0_36] : memref<1x64xf32, #tpu.memory_space<vmem>>, vector<1x64xf32>
    %111 = vector.broadcast %110 : vector<1x64xf32> to vector<16x64xf32>
    %112 = arith.addf %109, %111 : vector<16x64xf32>
    %cst_37 = arith.constant 0.353553385 : f32
    %113 = vector.broadcast %cst_37 : f32 to vector<8x32xf32>
    %114 = arith.mulf %107, %113 : vector<8x32xf32>
    %115 = vector.extract_strided_slice %112 {offsets = [0, 0], sizes = [16, 32], strides = [1, 1]} : vector<16x64xf32> to vector<16x32xf32>
    %116 = vector.extract_strided_slice %112 {offsets = [0, 32], sizes = [16, 32], strides = [1, 1]} : vector<16x64xf32> to vector<16x32xf32>
    %117 = arith.truncf %114 : vector<8x32xf32> to vector<8x32xbf16>
    %118 = vector.extract_strided_slice %117 {offsets = [0, 0], sizes = [8, 8], strides = [1, 1]} : vector<8x32xbf16> to vector<8x8xbf16>
    %119 = vector.extract_strided_slice %117 {offsets = [0, 8], sizes = [8, 8], strides = [1, 1]} : vector<8x32xbf16> to vector<8x8xbf16>
    %120 = vector.extract_strided_slice %117 {offsets = [0, 16], sizes = [8, 8], strides = [1, 1]} : vector<8x32xbf16> to vector<8x8xbf16>
    %121 = vector.extract_strided_slice %117 {offsets = [0, 24], sizes = [8, 8], strides = [1, 1]} : vector<8x32xbf16> to vector<8x8xbf16>
    %122 = vector.shape_cast %118 : vector<8x8xbf16> to vector<1x8x8xbf16>
    %123 = vector.shape_cast %119 : vector<8x8xbf16> to vector<1x8x8xbf16>
    %124 = vector.shape_cast %120 : vector<8x8xbf16> to vector<1x8x8xbf16>
    %125 = vector.shape_cast %121 : vector<8x8xbf16> to vector<1x8x8xbf16>
    %126 = tpu.concatenate %122, %123, %124, %125 in 0 : vector<1x8x8xbf16>, vector<1x8x8xbf16>, vector<1x8x8xbf16>, vector<1x8x8xbf16> -> vector<4x8x8xbf16>
    %127 = arith.truncf %115 : vector<16x32xf32> to vector<16x32xbf16>
    %128 = vector.extract_strided_slice %127 {offsets = [0, 0], sizes = [16, 8], strides = [1, 1]} : vector<16x32xbf16> to vector<16x8xbf16>
    %129 = vector.extract_strided_slice %127 {offsets = [0, 8], sizes = [16, 8], strides = [1, 1]} : vector<16x32xbf16> to vector<16x8xbf16>
    %130 = vector.extract_strided_slice %127 {offsets = [0, 16], sizes = [16, 8], strides = [1, 1]} : vector<16x32xbf16> to vector<16x8xbf16>
    %131 = vector.extract_strided_slice %127 {offsets = [0, 24], sizes = [16, 8], strides = [1, 1]} : vector<16x32xbf16> to vector<16x8xbf16>
    %132 = vector.shape_cast %128 : vector<16x8xbf16> to vector<1x16x8xbf16>
    %133 = vector.shape_cast %129 : vector<16x8xbf16> to vector<1x16x8xbf16>
    %134 = vector.shape_cast %130 : vector<16x8xbf16> to vector<1x16x8xbf16>
    %135 = vector.shape_cast %131 : vector<16x8xbf16> to vector<1x16x8xbf16>
    %136 = tpu.concatenate %132, %133, %134, %135 in 0 : vector<1x16x8xbf16>, vector<1x16x8xbf16>, vector<1x16x8xbf16>, vector<1x16x8xbf16> -> vector<4x16x8xbf16>
    %137 = arith.truncf %116 : vector<16x32xf32> to vector<16x32xbf16>
    %138 = vector.extract_strided_slice %137 {offsets = [0, 0], sizes = [16, 8], strides = [1, 1]} : vector<16x32xbf16> to vector<16x8xbf16>
    %139 = vector.extract_strided_slice %137 {offsets = [0, 8], sizes = [16, 8], strides = [1, 1]} : vector<16x32xbf16> to vector<16x8xbf16>
    %140 = vector.extract_strided_slice %137 {offsets = [0, 16], sizes = [16, 8], strides = [1, 1]} : vector<16x32xbf16> to vector<16x8xbf16>
    %141 = vector.extract_strided_slice %137 {offsets = [0, 24], sizes = [16, 8], strides = [1, 1]} : vector<16x32xbf16> to vector<16x8xbf16>
    %142 = vector.shape_cast %138 : vector<16x8xbf16> to vector<1x16x8xbf16>
    %143 = vector.shape_cast %139 : vector<16x8xbf16> to vector<1x16x8xbf16>
    %144 = vector.shape_cast %140 : vector<16x8xbf16> to vector<1x16x8xbf16>
    %145 = vector.shape_cast %141 : vector<16x8xbf16> to vector<1x16x8xbf16>
    %146 = tpu.concatenate %142, %143, %144, %145 in 0 : vector<1x16x8xbf16>, vector<1x16x8xbf16>, vector<1x16x8xbf16>, vector<1x16x8xbf16> -> vector<4x16x8xbf16>
    "tpu.trace_start"() <{level = 10 : i32, message = "hqd,hkd->hqk"}> : () -> ()
    %cst_38 = arith.constant dense<0.000000e+00> : vector<4x8x16xf32>
    %147 = tpu.matmul %126, %136, %cst_38 {dimension_numbers = #tpu.dot_dimension_numbers<[2], [2], [1], [1], [0, 0, 0, 1, 1, 1], [0], [0]>} : vector<4x8x8xbf16>, vector<4x16x8xbf16>, vector<4x8x16xf32> -> vector<4x8x16xf32>
    "tpu.trace_stop"() : () -> ()
    %cst_39 = arith.constant dense<0xFF800000> : vector<4x8xf32>
    %148 = vector.multi_reduction <maximumf>, %147, %cst_39 [2] : vector<4x8x16xf32> to vector<4x8xf32>
    %149 = vector.shape_cast %148 : vector<4x8xf32> to vector<4x8x1xf32>
    %150 = vector.broadcast %149 : vector<4x8x1xf32> to vector<4x8x16xf32>
    %151 = arith.subf %147, %150 : vector<4x8x16xf32>
    %152 = math.exp %151 : vector<4x8x16xf32>
    %cst_40 = arith.constant dense<0.000000e+00> : vector<4x8xf32>
    %153 = vector.multi_reduction <add>, %152, %cst_40 [2] : vector<4x8x16xf32> to vector<4x8xf32>
    %154 = vector.shape_cast %153 : vector<4x8xf32> to vector<4x8x1xf32>
    %155 = tpu.reciprocal %154 {approx = true} : vector<4x8x1xf32> -> vector<4x8x1xf32>
    %156 = vector.broadcast %155 : vector<4x8x1xf32> to vector<4x8x16xf32>
    %157 = arith.mulf %152, %156 : vector<4x8x16xf32>
    %158 = arith.truncf %157 : vector<4x8x16xf32> to vector<4x8x16xbf16>
    "tpu.trace_start"() <{level = 10 : i32, message = "hqk,hkd->hqd"}> : () -> ()
    %cst_41 = arith.constant dense<0.000000e+00> : vector<4x8x8xf32>
    %159 = tpu.matmul %158, %146, %cst_41 {dimension_numbers = #tpu.dot_dimension_numbers<[2], [1], [1], [2], [0, 0, 0, 1, 1, 2], [0], [0]>} : vector<4x8x16xbf16>, vector<4x16x8xbf16>, vector<4x8x8xf32> -> vector<4x8x8xf32>
    "tpu.trace_stop"() : () -> ()
    %160 = vector.extract_strided_slice %159 {offsets = [0, 0, 0], sizes = [1, 8, 8], strides = [1, 1, 1]} : vector<4x8x8xf32> to vector<1x8x8xf32>
    %161 = vector.shape_cast %160 : vector<1x8x8xf32> to vector<8x8xf32>
    %162 = vector.extract_strided_slice %159 {offsets = [1, 0, 0], sizes = [1, 8, 8], strides = [1, 1, 1]} : vector<4x8x8xf32> to vector<1x8x8xf32>
    %163 = vector.shape_cast %162 : vector<1x8x8xf32> to vector<8x8xf32>
    %164 = vector.extract_strided_slice %159 {offsets = [2, 0, 0], sizes = [1, 8, 8], strides = [1, 1, 1]} : vector<4x8x8xf32> to vector<1x8x8xf32>
    %165 = vector.shape_cast %164 : vector<1x8x8xf32> to vector<8x8xf32>
    %166 = vector.extract_strided_slice %159 {offsets = [3, 0, 0], sizes = [1, 8, 8], strides = [1, 1, 1]} : vector<4x8x8xf32> to vector<1x8x8xf32>
    %167 = vector.shape_cast %166 : vector<1x8x8xf32> to vector<8x8xf32>
    %168 = tpu.concatenate %161, %163, %165, %167 in 1 : vector<8x8xf32>, vector<8x8xf32>, vector<8x8xf32>, vector<8x8xf32> -> vector<8x32xf32>
    %169 = arith.truncf %168 : vector<8x32xf32> to vector<8x32xbf16>
    %c0_42 = arith.constant 0 : index
    %c0_43 = arith.constant 0 : index
    %170 = vector.load %arg10[%c0_42, %c0_43] : memref<32x32xbf16, #tpu.memory_space<vmem>>, vector<32x32xbf16>
    %cst_44 = arith.constant dense<0.000000e+00> : vector<8x32xf32>
    %171 = tpu.matmul %169, %170, %cst_44 {dimension_numbers = #tpu.dot_dimension_numbers<[1], [0], [0], [1], [0, 0, 1, 1], [], []>} : vector<8x32xbf16>, vector<32x32xbf16>, vector<8x32xf32> -> vector<8x32xf32>
    %172 = arith.addf %171, %101 : vector<8x32xf32>
    %c2 = arith.constant 2 : index
    %c0_45 = arith.constant 0 : index
    %173 = vector.load %arg15[%c2, %c0_45] : memref<6x32xf32, #tpu.memory_space<vmem>>, vector<1x32xf32>
    %c3 = arith.constant 3 : index
    %c0_46 = arith.constant 0 : index
    %174 = vector.load %arg15[%c3, %c0_46] : memref<6x32xf32, #tpu.memory_space<vmem>>, vector<1x32xf32>
    %cst_47 = arith.constant dense<0.000000e+00> : vector<8xf32>
    %175 = vector.multi_reduction <add>, %172, %cst_47 [1] : vector<8x32xf32> to vector<8xf32>
    %176 = vector.shape_cast %175 : vector<8xf32> to vector<8x1xf32>
    %cst_48 = arith.constant 3.200000e+01 : f32
    %177 = vector.broadcast %cst_48 : f32 to vector<8x1xf32>
    %178 = arith.divf %176, %177 : vector<8x1xf32>
    %179 = vector.broadcast %178 : vector<8x1xf32> to vector<8x32xf32>
    %180 = arith.subf %172, %179 : vector<8x32xf32>
    %181 = arith.mulf %180, %180 : vector<8x32xf32>
    %cst_49 = arith.constant dense<0.000000e+00> : vector<8xf32>
    %182 = vector.multi_reduction <add>, %181, %cst_49 [1] : vector<8x32xf32> to vector<8xf32>
    %183 = vector.shape_cast %182 : vector<8xf32> to vector<8x1xf32>
    %cst_50 = arith.constant 3.200000e+01 : f32
    %184 = vector.broadcast %cst_50 : f32 to vector<8x1xf32>
    %185 = arith.divf %183, %184 : vector<8x1xf32>
    %cst_51 = arith.constant 9.99999974E-6 : f32
    %186 = vector.broadcast %cst_51 : f32 to vector<8x1xf32>
    %187 = arith.addf %185, %186 : vector<8x1xf32>
    %188 = math.rsqrt %187 : vector<8x1xf32>
    %189 = vector.broadcast %188 : vector<8x1xf32> to vector<8x32xf32>
    %190 = arith.mulf %180, %189 : vector<8x32xf32>
    %191 = vector.broadcast %173 : vector<1x32xf32> to vector<8x32xf32>
    %192 = arith.mulf %190, %191 : vector<8x32xf32>
    %193 = vector.broadcast %174 : vector<1x32xf32> to vector<8x32xf32>
    %194 = arith.addf %192, %193 : vector<8x32xf32>
    %195 = arith.truncf %194 : vector<8x32xf32> to vector<8x32xbf16>
    %c0_52 = arith.constant 0 : index
    %c0_53 = arith.constant 0 : index
    %196 = vector.load %arg11[%c0_52, %c0_53] : memref<32x64xbf16, #tpu.memory_space<vmem>>, vector<32x64xbf16>
    %cst_54 = arith.constant dense<0.000000e+00> : vector<8x64xf32>
    %197 = tpu.matmul %195, %196, %cst_54 {dimension_numbers = #tpu.dot_dimension_numbers<[1], [0], [0], [1], [0, 0, 1, 1], [], []>} : vector<8x32xbf16>, vector<32x64xbf16>, vector<8x64xf32> -> vector<8x64xf32>
    %c0_55 = arith.constant 0 : index
    %c0_56 = arith.constant 0 : index
    %198 = vector.load %arg12[%c0_55, %c0_56] : memref<1x64xf32, #tpu.memory_space<vmem>>, vector<1x64xf32>
    %199 = vector.broadcast %198 : vector<1x64xf32> to vector<8x64xf32>
    %200 = arith.addf %197, %199 : vector<8x64xf32>
    %cst_57 = arith.constant 0.000000e+00 : f32
    %201 = vector.broadcast %cst_57 : f32 to vector<8x64xf32>
    %202 = arith.maximumf %200, %201 : vector<8x64xf32>
    %203 = arith.truncf %202 : vector<8x64xf32> to vector<8x64xbf16>
    %c0_58 = arith.constant 0 : index
    %c0_59 = arith.constant 0 : index
    %204 = vector.load %arg13[%c0_58, %c0_59] : memref<64x32xbf16, #tpu.memory_space<vmem>>, vector<64x32xbf16>
    %cst_60 = arith.constant dense<0.000000e+00> : vector<8x32xf32>
    %205 = tpu.matmul %203, %204, %cst_60 {dimension_numbers = #tpu.dot_dimension_numbers<[1], [0], [0], [1], [0, 0, 1, 1], [], []>} : vector<8x64xbf16>, vector<64x32xbf16>, vector<8x32xf32> -> vector<8x32xf32>
    %c0_61 = arith.constant 0 : index
    %c0_62 = arith.constant 0 : index
    %206 = vector.load %arg14[%c0_61, %c0_62] : memref<1x32xf32, #tpu.memory_space<vmem>>, vector<1x32xf32>
    %207 = vector.broadcast %206 : vector<1x32xf32> to vector<8x32xf32>
    %208 = arith.addf %205, %207 : vector<8x32xf32>
    %209 = arith.addf %208, %194 : vector<8x32xf32>
    %c4 = arith.constant 4 : index
    %c0_63 = arith.constant 0 : index
    %210 = vector.load %arg15[%c4, %c0_63] : memref<6x32xf32, #tpu.memory_space<vmem>>, vector<1x32xf32>
    %c5 = arith.constant 5 : index
    %c0_64 = arith.constant 0 : index
    %211 = vector.load %arg15[%c5, %c0_64] : memref<6x32xf32, #tpu.memory_space<vmem>>, vector<1x32xf32>
    %cst_65 = arith.constant dense<0.000000e+00> : vector<8xf32>
    %212 = vector.multi_reduction <add>, %209, %cst_65 [1] : vector<8x32xf32> to vector<8xf32>
    %213 = vector.shape_cast %212 : vector<8xf32> to vector<8x1xf32>
    %cst_66 = arith.constant 3.200000e+01 : f32
    %214 = vector.broadcast %cst_66 : f32 to vector<8x1xf32>
    %215 = arith.divf %213, %214 : vector<8x1xf32>
    %216 = vector.broadcast %215 : vector<8x1xf32> to vector<8x32xf32>
    %217 = arith.subf %209, %216 : vector<8x32xf32>
    %218 = arith.mulf %217, %217 : vector<8x32xf32>
    %cst_67 = arith.constant dense<0.000000e+00> : vector<8xf32>
    %219 = vector.multi_reduction <add>, %218, %cst_67 [1] : vector<8x32xf32> to vector<8xf32>
    %220 = vector.shape_cast %219 : vector<8xf32> to vector<8x1xf32>
    %cst_68 = arith.constant 3.200000e+01 : f32
    %221 = vector.broadcast %cst_68 : f32 to vector<8x1xf32>
    %222 = arith.divf %220, %221 : vector<8x1xf32>
    %cst_69 = arith.constant 9.99999974E-6 : f32
    %223 = vector.broadcast %cst_69 : f32 to vector<8x1xf32>
    %224 = arith.addf %222, %223 : vector<8x1xf32>
    %225 = math.rsqrt %224 : vector<8x1xf32>
    %226 = vector.broadcast %225 : vector<8x1xf32> to vector<8x32xf32>
    %227 = arith.mulf %217, %226 : vector<8x32xf32>
    %228 = vector.broadcast %210 : vector<1x32xf32> to vector<8x32xf32>
    %229 = arith.mulf %227, %228 : vector<8x32xf32>
    %230 = vector.broadcast %211 : vector<1x32xf32> to vector<8x32xf32>
    %231 = arith.addf %229, %230 : vector<8x32xf32>
    %232 = arith.truncf %231 : vector<8x32xf32> to vector<8x32xbf16>
    %c0_70 = arith.constant 0 : index
    %c0_71 = arith.constant 0 : index
    %c0_72 = arith.constant 0 : index
    %233 = vector.load %arg16[%c0_70, %c0_71, %c0_72] : memref<1x8x32xbf16, #tpu.memory_space<vmem>>, vector<1x8x32xbf16>
    %234 = vector.shape_cast %233 : vector<1x8x32xbf16> to vector<8x32xbf16>
    %235 = vector.shape_cast %232 : vector<8x32xbf16> to vector<1x8x32xbf16>
    tpu.vector_store %arg16[%c0_70, %c0_71, %c0_72], %235 {strides = array<i32>} : memref<1x8x32xbf16, #tpu.memory_space<vmem>>, vector<1x8x32xbf16>,
    return
  }
  func.func @transform_0(%arg0: i32) -> (i32, i32, i32) {
    %c0_i32 = arith.constant 0 : i32
    %c0_i32_0 = arith.constant 0 : i32
    %c0_i32_1 = arith.constant 0 : i32
    return %arg0, %c0_i32, %c0_i32_0 : i32, i32, i32
  }
  func.func @transform_1(%arg0: i32) -> (i32, i32, i32) {
    %c0_i32 = arith.constant 0 : i32
    %c0_i32_0 = arith.constant 0 : i32
    %c0_i32_1 = arith.constant 0 : i32
    return %arg0, %c0_i32, %c0_i32_0 : i32, i32, i32
  }
  func.func @transform_2(%arg0: i32) -> (i32, i32) {
    %c0_i32 = arith.constant 0 : i32
    %c0_i32_0 = arith.constant 0 : i32
    %c0_i32_1 = arith.constant 0 : i32
    return %c0_i32, %c0_i32_0 : i32, i32
  }
  func.func @transform_3(%arg0: i32) -> (i32, i32) {
    %c0_i32 = arith.constant 0 : i32
    %c0_i32_0 = arith.constant 0 : i32
    %c0_i32_1 = arith.constant 0 : i32
    return %c0_i32, %c0_i32_0 : i32, i32
  }
  func.func @transform_4(%arg0: i32) -> (i32, i32) {
    %c0_i32 = arith.constant 0 : i32
    %c0_i32_0 = arith.constant 0 : i32
    %c0_i32_1 = arith.constant 0 : i32
    return %c0_i32, %c0_i32_0 : i32, i32
  }
  func.func @transform_5(%arg0: i32) -> (i32, i32) {
    %c0_i32 = arith.constant 0 : i32
    %c0_i32_0 = arith.constant 0 : i32
    %c0_i32_1 = arith.constant 0 : i32
    return %c0_i32, %c0_i32_0 : i32, i32
  }
  func.func @transform_6(%arg0: i32) -> (i32, i32) {
    %c0_i32 = arith.constant 0 : i32
    %c0_i32_0 = arith.constant 0 : i32
    %c0_i32_1 = arith.constant 0 : i32
    return %c0_i32, %c0_i32_0 : i32, i32
  }
  func.func @transform_7(%arg0: i32) -> (i32, i32) {
    %c0_i32 = arith.constant 0 : i32
    %c0_i32_0 = arith.constant 0 : i32
    %c0_i32_1 = arith.constant 0 : i32
    return %c0_i32, %c0_i32_0 : i32, i32
  }
  func.func @transform_8(%arg0: i32) -> (i32, i32) {
    %c0_i32 = arith.constant 0 : i32
    %c0_i32_0 = arith.constant 0 : i32
    %c0_i32_1 = arith.constant 0 : i32
    return %c0_i32, %c0_i32_0 : i32, i32
  }
  func.func @transform_9(%arg0: i32) -> (i32, i32) {
    %c0_i32 = arith.constant 0 : i32
    %c0_i32_0 = arith.constant 0 : i32
    %c0_i32_1 = arith.constant 0 : i32
    return %c0_i32, %c0_i32_0 : i32, i32
  }
  func.func @transform_10(%arg0: i32) -> (i32, i32) {
    %c0_i32 = arith.constant 0 : i32
    %c0_i32_0 = arith.constant 0 : i32
    %c0_i32_1 = arith.constant 0 : i32
    return %c0_i32, %c0_i32_0 : i32, i32
  }
  func.func @transform_11(%arg0: i32) -> (i32, i32) {
    %c0_i32 = arith.constant 0 : i32
    %c0_i32_0 = arith.constant 0 : i32
    %c0_i32_1 = arith.constant 0 : i32
    return %c0_i32, %c0_i32_0 : i32, i32
  }
  func.func @transform_12(%arg0: i32) -> (i32, i32) {
    %c0_i32 = arith.constant 0 : i32
    %c0_i32_0 = arith.constant 0 : i32
    %c0_i32_1 = arith.constant 0 : i32
    return %c0_i32, %c0_i32_0 : i32, i32
  }
  func.func @transform_13(%arg0: i32) -> (i32, i32) {
    %c0_i32 = arith.constant 0 : i32
    %c0_i32_0 = arith.constant 0 : i32
    %c0_i32_1 = arith.constant 0 : i32
    return %c0_i32, %c0_i32_0 : i32, i32
  }
  func.func @transform_14(%arg0: i32) -> (i32, i32) {
    %c0_i32 = arith.constant 0 : i32
    %c0_i32_0 = arith.constant 0 : i32
    %c0_i32_1 = arith.constant 0 : i32
    return %c0_i32, %c0_i32_0 : i32, i32
  }
  func.func @transform_15(%arg0: i32) -> (i32, i32, i32) {
    %c0_i32 = arith.constant 0 : i32
    %c0_i32_0 = arith.constant 0 : i32
    %c0_i32_1 = arith.constant 0 : i32
    return %arg0, %c0_i32, %c0_i32_0 : i32, i32, i32
  }
}

</mosaic_0001>

<bundles_post_ra>
// kernel: tpu_custom_call.1
= control target key start
LH: loop header
LB: loop body
LE: loop exit
PB: predicated region body
PF: predicated region fallthrough
CT: control target
= control target key end

     0   :  { %s3697_s0 = inlined_call_operand.hbm [shape: bf16[2,8,32], index: 0, kind: input, shape index: {}]   ;;  %s3698_s1 = inlined_call_operand.vmem [shape: bf16[2,16,32], index: 1, kind: input, shape index: {}]   ;;  %s3699_s2 = inlined_call_operand.vmem [shape: bf16[32,96], index: 2, kind: input, shape index: {}]   ;;  %s3700_s3 = inlined_call_operand.vmem [shape: f32[1,96], index: 3, kind: input, shape index: {}]   ;;  %s3701_s4 = inlined_call_operand.vmem [shape: bf16[32,32], index: 4, kind: input, shape index: {}]   ;;  %s3702_s5 = inlined_call_operand.hbm [shape: bf16[32,32], index: 5, kind: input, shape index: {}]   ;;  %s3703_s6 = inlined_call_operand.hbm [shape: f32[1,32], index: 6, kind: input, shape index: {}]   ;;  %s3704_s7 = inlined_call_operand.hbm [shape: bf16[32,64], index: 7, kind: input, shape index: {}]   ;;  %s3705_s8 = inlined_call_operand.hbm [shape: f32[1,64], index: 8, kind: input, shape index: {}]   ;;  %s3706_s9 = inlined_call_operand.vmem [shape: bf16[32,32], index: 9, kind: input, shape index: {}]   ;;  %s3707_s10 = inlined_call_operand.hbm [shape: bf16[32,64], index: 10, kind: input, shape index: {}]   ;;  %s3708_s11 = inlined_call_operand.hbm [shape: f32[1,64], index: 11, kind: input, shape index: {}]   ;;  %s3709_s12 = inlined_call_operand.vmem [shape: bf16[64,32], index: 12, kind: input, shape index: {}]   ;;  %s3710_s13 = inlined_call_operand.vmem [shape: f32[1,32], index: 13, kind: input, shape index: {}]   ;;  %s3711_s14 = inlined_call_operand.vmem [shape: f32[6,32], index: 14, kind: input, shape index: {}]   ;;  %s3712_s15 = inlined_call_operand.hbm [shape: bf16[2,8,32], index: 15, kind: output, shape index: {}]  }
   0x1   :  { %3724 = sst [smem:[#allocation20_spill]] %s3697_s0 }
   0x2   :  { %3725 = sst [smem:[#allocation21_spill]] %s3698_s1 }
   0x3   :  { %3726 = sst [smem:[#allocation22_spill]] %s3699_s2 }
   0x4   :  { %3727 = sst [smem:[#allocation23_spill]] %s3701_s4 }
   0x5   :  { %3728 = sst [smem:[#allocation24_spill]] %s3702_s5 }
   0x6   :  { %3729 = sst [smem:[#allocation25_spill]] %s3706_s9 }
   0x7   :  { %3730 = sst [smem:[#allocation26_spill]] %s3709_s12 }
   0x8   :  { %3731 = sst [smem:[#allocation27_spill]] %s3710_s13 }
   0x9   :  { %3732 = sst [smem:[#allocation28_spill]] %s3711_s14 }
   0xa   :  { %3733 = sst [smem:[#allocation29_spill]] %s3712_s15 }
   0xb   :  { %20 = vsyncpa [#allocation3], 0 }
   0xc   :  { %22 = vsyncpa [#allocation3 + $0x1], 0 }
   0xd   :  { %23 = vsyncpa [#allocation6], 0 }
   0xe   :  { %24 = vsyncpa [#allocation9], 0 }
   0xf   :  { %25 = vsyncpa [#allocation12], 0 }
  0x10   :  { %26 = vsyncpa [#allocation4], 0 }
  0x11   :  { %28 = vsyncpa [#allocation4 + $0x1], 0  ;;  %s3092_s18 = smov 0   ;;  %s3094_s19 = smov 0  }
  0x12   :  { %s3096_s20 = smov 0   ;;  %s3098_s21 = smov 0  }
  0x13 LB: > { %s2991_s22 = smov [#allocation5]   ;;  %s3113_s24 = sadd.s32 4294967295, %s2989_s21   ;;  %s2989_s21 = sphi %s3098_s21, %s3768_s21   ;;  %s2985_s20 = sphi %s3096_s20, %s3767_s20   ;;  %s2981_s19 = sphi %s3094_s19, %s3766_s19   ;;  %s2977_s18 = sphi %s3092_s18, %s3765_s18  }
  0x14   : > { %s411_s23 = sshll.u32 %s2991_s22, 4  ;;  %p2250_p0 = scmp.ge.s32.totalorder %s2989_s21, 1  ;;  %s3118_s23 = int_to_ptr.vmem [resolvable:$true] %s411_s23 }
  0x15   : > { %p3718_p1 = scmp.eq.s32.totalorder %s3113_s24, 0  ;;  %p390_p2 = scmp.lt.s32.totalorder %s2989_s21, 3 }
  0x16   : > { %s2992_s26 = smov [#allocation8]   ;;  %s2993_s29 = smov [#allocation11]  }
  0x17   : > { %p3120_p3 = pnand %p2250_p0, %p390_p2  ;;  %s435_s27 = sshll.u32 %s2992_s26, 4  ;;  %s3133_s27 = int_to_ptr.vmem [resolvable:$true] %s435_s27 }
  0x18   : > { %s462_s30 = sshll.u32 %s2993_s29, 4  ;;  %s3736_s5 = sld [smem:[#allocation24_spill]]  ;;  %s3135_s30 = int_to_ptr.vmem [resolvable:$true] %s462_s30 }
  0x19   : > { %s3734_s25 = scalar_select %p3120_p3, 1, 0 }
  0x1a   : > { %p2566_p5 = pneg %p3120_p3 }
  0x1c   : > { %p3129_p6 = pnand %p2566_p5, %p3718_p1 }
  0x1e   : > { %s2713_s22 = scalar_lea.hbm %s3736_s5, 256  ;;  %p3145_p8 = pneg %p3129_p6 }
  0x1f   : > { %p2714_p7 = scmp.ne.s32.totalorder %s3736_s5, %s2713_s22  ;;  %p2720_p11 = scmp.lt.u32.totalorder %s2713_s22, %s3736_s5 }
  0x21   : > { %p2716_p9 = pnand %p3145_p8, %p2714_p7 }
  0x23   : > { %p2717_p10 = pneg %p2716_p9 }
  0x25   : > { %p2722_p12 = pnand %p2720_p11, %p2717_p10 }
  0x27   : > { %2725 = shalt.err (!%p2722_p12)
}
  0x28   : > { %s2726_s13 = scalar_lea.vmem %s3118_s23, 256  ;;  %p2734_p5 = scmp.lt.s32.totalorder %s3118_s23, %s3118_s23 }
  0x29   : > { %p2727_p13 = scmp.ne.s32.totalorder %s3118_s23, %s2726_s13  ;;  %p2735_p4 = scmp.lt.s32.totalorder %s2726_s13, %s2726_s13 }
  0x2b   : > { %p2729_p0 = pnand %p2727_p13, %p3145_p8  ;;  %p2736_p7 = por %p2735_p4, %p2734_p5 }
  0x2d   : > { %p2730_p2 = pneg %p2729_p0 }
  0x2f   : > { %p2737_p9 = pnand %p2736_p7, %p2730_p2 }
  0x31   : > { %2740 = shalt.err (!%p2737_p9)
}
  0x32   : > { %s2994_s15 = smov 64   ;;  %s2995_s12 = smov 4  }
  0x33   : > { %2569 = dma.hbm_to_vmem [thread:$0]  (!%p3129_p6), %s3736_s5, 256, %s3118_s23, [#allocation6], %s2994_s15, %s2994_s15, %s2995_s12  }
  0x34   : > { %s2741_s13 = scalar_lea.hbm %s3704_s7, 256 }
  0x35   : > { %p2742_p4 = scmp.ne.s32.totalorder %s3704_s7, %s2741_s13  ;;  %p2748_p12 = scmp.lt.u32.totalorder %s2741_s13, %s3704_s7 }
  0x37   : > { %p2744_p10 = pnand %p2742_p4, %p3145_p8 }
  0x39   : > { %p2745_p11 = pneg %p2744_p10 }
  0x3b   : > { %p2750_p13 = pnand %p2748_p12, %p2745_p11 }
  0x3d   : > { %2753 = shalt.err (!%p2750_p13)
}
  0x3e   : > { %s2754_s23 = scalar_lea.vmem %s3133_s27, 256  ;;  %p2762_p7 = scmp.lt.s32.totalorder %s3133_s27, %s3133_s27 }
  0x3f   : > { %p2755_p0 = scmp.ne.s32.totalorder %s3133_s27, %s2754_s23  ;;  %p2763_p9 = scmp.lt.s32.totalorder %s2754_s23, %s2754_s23 }
  0x41   : > { %p2757_p2 = pnand %p2755_p0, %p3145_p8  ;;  %p2764_p4 = por %p2763_p9, %p2762_p7 }
  0x43   : > { %p2758_p5 = pneg %p2757_p2 }
  0x45   : > { %p2765_p10 = pnand %p2764_p4, %p2758_p5 }
  0x47   : > { %2768 = shalt.err (!%p2765_p10)
}
  0x48   : > { %2575 = dma.hbm_to_vmem [thread:$0]  (!%p3129_p6), %s3704_s7, 256, %s3133_s27, [#allocation9], %s2994_s15, %s2994_s15, %s2995_s12  }
  0x49   : > { %s2769_s16 = scalar_lea.hbm %s3707_s10, 256 }
  0x4a   : > { %p2770_p11 = scmp.ne.s32.totalorder %s3707_s10, %s2769_s16  ;;  %p2776_p0 = scmp.lt.u32.totalorder %s2769_s16, %s3707_s10 }
  0x4c   : > { %p2772_p12 = pnand %p2770_p11, %p3145_p8 }
  0x4e   : > { %p2773_p13 = pneg %p2772_p12 }
  0x50   : > { %p2778_p2 = pnand %p2776_p0, %p2773_p13 }
  0x52   : > { %2781 = shalt.err (!%p2778_p2)
}
  0x53   : > { %s2782_s27 = scalar_lea.vmem %s3135_s30, 256  ;;  %p2790_p4 = scmp.lt.s32.totalorder %s3135_s30, %s3135_s30 }
  0x54   : > { %p2783_p5 = scmp.ne.s32.totalorder %s3135_s30, %s2782_s27  ;;  %p2791_p10 = scmp.lt.s32.totalorder %s2782_s27, %s2782_s27 }
  0x56   : > { %p2785_p7 = pnand %p2783_p5, %p3145_p8  ;;  %p2792_p11 = por %p2791_p10, %p2790_p4 }
  0x58   : > { %p2786_p9 = pneg %p2785_p7 }
  0x5a   : > { %p2793_p12 = pnand %p2792_p11, %p2786_p9 }
  0x5c   : > { %2796 = shalt.err (!%p2793_p12)
}
  0x5d   : > { %2581 = dma.hbm_to_vmem [thread:$0]  (!%p3129_p6), %s3707_s10, 256, %s3135_s30, [#allocation12], %s2994_s15, %s2994_s15, %s2995_s12  }
  0x5e   : > { %s2996_s4 = smov [#allocation7]   ;;  %s2997_s14 = smov [#allocation10]  }
  0x5f   : > { %s425_s9 = sshll.u32 %s2996_s4, 4  ;;  %s449_s16 = sshll.u32 %s2997_s14, 4  ;;  %s426_s9 = int_to_ptr.vmem [resolvable:$true] %s425_s9  ;;  %s450_s16 = int_to_ptr.vmem [resolvable:$true] %s449_s16 }
  0x60   : > { %s2797_s29 = scalar_lea.hbm %s3703_s6, 16 }
  0x61   : > { %p2798_p13 = scmp.ne.s32.totalorder %s3703_s6, %s2797_s29  ;;  %p2804_p5 = scmp.lt.u32.totalorder %s2797_s29, %s3703_s6 }
  0x63   : > { %p2800_p0 = pnand %p2798_p13, %p3145_p8 }
  0x65   : > { %p2801_p2 = pneg %p2800_p0 }
  0x67   : > { %p2806_p7 = pnand %p2804_p5, %p2801_p2 }
  0x69   : > { %2809 = shalt.err (!%p2806_p7)
}
  0x6a   : > { %s2810_s30 = scalar_lea.vmem %s426_s9, 16  ;;  %s2817_s15 = scalar_lea.vmem %s426_s9, 32 }
  0x6b   : > { %p2811_p9 = scmp.ne.s32.totalorder %s426_s9, %s2810_s30  ;;  %p2818_p11 = scmp.lt.s32.totalorder %s426_s9, %s426_s9 }
  0x6c   : > { %p2819_p12 = scmp.lt.s32.totalorder %s2817_s15, %s2810_s30 }
  0x6d   : > { %p2813_p4 = pnand %p2811_p9, %p3145_p8 }
  0x6e   : > { %p2820_p1 = por %p2819_p12, %p2818_p11 }
  0x6f   : > { %p2814_p10 = pneg %p2813_p4 }
  0x71   : > { %p2821_p3 = pnand %p2820_p1, %p2814_p10 }
  0x73   : > { %2824 = shalt.err (!%p2821_p3)
}
  0x74   : > { %2572 = dma.hbm_to_vmem [thread:$0]  (!%p3129_p6), %s3703_s6, 16, %s426_s9, [#allocation6]  }
  0x75   : > { %s2825_s14 = scalar_lea.hbm %s3705_s8, 16 }
  0x76   : > { %p2826_p13 = scmp.ne.s32.totalorder %s3705_s8, %s2825_s14  ;;  %p2832_p3 = scmp.lt.u32.totalorder %s2825_s14, %s3705_s8 }
  0x78   : > { %p2828_p0 = pnand %p2826_p13, %p3145_p8 }
  0x7a   : > { %p2829_p1 = pneg %p2828_p0 }
  0x7c   : > { %p2834_p2 = pnand %p2832_p3, %p2829_p1 }
  0x7e   : > { %2837 = shalt.err (!%p2834_p2)
}
  0x7f   : > { %s2838_s27 = scalar_lea.vmem %s450_s16, 16  ;;  %s2845_s9 = scalar_lea.vmem %s450_s16, 32 }
  0x80   : > { %p2839_p5 = scmp.ne.s32.totalorder %s450_s16, %s2838_s27  ;;  %p2846_p4 = scmp.lt.s32.totalorder %s450_s16, %s450_s16 }
  0x81   : > { %p2847_p10 = scmp.lt.s32.totalorder %s2845_s9, %s2838_s27 }
  0x82   : > { %p2841_p7 = pnand %p2839_p5, %p3145_p8 }
  0x83   : > { %p2848_p11 = por %p2847_p10, %p2846_p4 }
  0x84   : > { %p2842_p9 = pneg %p2841_p7 }
  0x86   : > { %p2849_p12 = pnand %p2848_p11, %p2842_p9 }
  0x88   : > { %2852 = shalt.err (!%p2849_p12)
}
  0x89   : > { %2578 = dma.hbm_to_vmem [thread:$0]  (!%p3129_p6), %s3705_s8, 16, %s450_s16, [#allocation9]  }
  0x8a   : > { %s2998_s15 = smov [#allocation13]   ;;  %s2853_s4 = scalar_lea.hbm %s3708_s11, 16 }
  0x8b   : > { %s476_s12 = sshll.u32 %s2998_s15, 4  ;;  %p2854_p13 = scmp.ne.s32.totalorder %s3708_s11, %s2853_s4  ;;  %s477_s12 = int_to_ptr.vmem [resolvable:$true] %s476_s12 }
  0x8c   : > { %p2860_p3 = scmp.lt.u32.totalorder %s2853_s4, %s3708_s11 }
  0x8d   : > { %p2856_p0 = pnand %p2854_p13, %p3145_p8 }
  0x8f   : > { %p2857_p1 = pneg %p2856_p0 }
  0x91   : > { %p2862_p2 = pnand %p2860_p3, %p2857_p1 }
  0x93   : > { %2865 = shalt.err (!%p2862_p2)
}
  0x94   : > { %s2866_s16 = scalar_lea.vmem %s477_s12, 16  ;;  %s2873_s13 = scalar_lea.vmem %s477_s12, 32 }
  0x95   : > { %p2867_p5 = scmp.ne.s32.totalorder %s477_s12, %s2866_s16  ;;  %p2874_p4 = scmp.lt.s32.totalorder %s477_s12, %s477_s12 }
  0x96   : > { %p2875_p10 = scmp.lt.s32.totalorder %s2873_s13, %s2866_s16 }
  0x97   : > { %p2869_p7 = pnand %p2867_p5, %p3145_p8 }
  0x98   : > { %p2876_p11 = por %p2875_p10, %p2874_p4 }
  0x99   : > { %p2870_p9 = pneg %p2869_p7 }
  0x9b   : > { %p2877_p12 = pnand %p2876_p11, %p2870_p9 }
  0x9d   : > { %2880 = shalt.err (!%p2877_p12)
}
  0x9e   : > { %2584 = dma.hbm_to_vmem [thread:$0]  (!%p3129_p6), %s3708_s11, 16, %s477_s12, [#allocation12]  }
  0x9f   : > { %s2249_s26 = sadd.s32 4294967294, %s2989_s21   ;;  %s3277_s28 = sadd.s32 1, %s2989_s21  }
  0xa0   : > { %s38_s23 = ssub.s32 %s2989_s21, %s3277_s28  ;;  %s41_s30 = sadd.s32 1, %s2985_s20 }
  0xa1   : > { %p39_p8 = scmp.eq.s32.totalorder %s38_s23, 0  ;;  %p48_p13 = scmp.ne.s32.totalorder %s2985_s20, %s2981_s19 }
  0xa2   : > { %p49_p0 = scmp.eq.s32.totalorder %s2989_s21, 0  ;;  %p54_p1 = scmp.ne.s32.totalorder %s2981_s19, %s2977_s18 }
  0xa3   : > { %s3288_s15 = scalar_select %p39_p8, %s2985_s20, %s41_s30  }
  0xa4   : > { %p3290_p3 = por %p49_p0, %p48_p13  ;;  %p3739_p2 = scmp.eq.s32.totalorder %s3113_s24, 0 }
  0xa5   : > { %p377_p5 = scmp.eq.s32.totalorder %s3113_s24, 1  ;;  %p383_p7 = scmp.eq.s32.totalorder %s2249_s26, 1 }
  0xa6   : > { %p3296_p6 = por %p3739_p2, %p54_p1  ;;  %p2599_p9 = scmp.lt.s32.totalorder %s2989_s21, 2 }
  0xa7   : > { %s496_s5 = sand.u32 1, %s2985_s20   ;;  %p3303_p4 = por %p377_p5, %p48_p13 }
  0xa8   : > { %p3307_p10 = por %p383_p7, %p54_p1  ;;  %s2258_s17 = sshll.u32 %s496_s5, 2 }
  0xa9   : > { %s3741_s4 = scalar_select %p3303_p4, 1, 0 }
  0xaa   : > { %s3742_s14 = scalar_select %p3307_p10, 1, 0 }
  0xab   : > { %s2259_s22 = sshll.u32 %s2989_s21, 6  ;;  %s3743_s0 = sld [smem:[#allocation20_spill]] }
  0xac   : > { %s500_s27 = scalar_lea.vmem [#allocation2], %s2258_s17  ;;  %p3321_p11 = pnand %p2599_p9, %p3290_p3 }
  0xad   : > { %s507_s9 = sshll.u32 %s500_s27, 4  ;;  %s497_s23 = scalar_lea.sflag [#allocation3], %s496_s5  ;;  %s3317_s9 = int_to_ptr.vmem [resolvable:$true] %s507_s9 }
  0xae   : > { %p2883_p8 = pneg %p3321_p11 }
  0xb1   : > { %s3315_s13 = scalar_lea.hbm %s3743_s0, %s2259_s22  ;;  %s2886_s29 = scalar_lea.hbm %s3743_s0, 128 }
  0xb2   : > { %s2881_s30 = scalar_lea.hbm %s3315_s13, 64  ;;  %p2887_p1 = scmp.lt.u32.totalorder %s3315_s13, %s3743_s0 }
  0xb3   : > { %p2882_p12 = scmp.ne.s32.totalorder %s3315_s13, %s2881_s30  ;;  %p2888_p3 = scmp.lt.u32.totalorder %s2886_s29, %s2881_s30 }
  0xb4   : > { %p2890_p5 = scmp.lt.u32.totalorder %s2881_s30, %s3315_s13 }
  0xb5   : > { %p2884_p13 = pnand %p2883_p8, %p2882_p12  ;;  %p2889_p2 = por %p2888_p3, %p2887_p1 }
  0xb7   : > { %p2885_p0 = pneg %p2884_p13  ;;  %p2891_p7 = por %p2890_p5, %p2889_p2 }
  0xb9   : > { %p2892_p9 = pnand %p2891_p7, %p2885_p0 }
  0xbb   : > { %2895 = shalt.err (!%p2892_p9)
}
  0xbc   : > { %s2896_s5 = scalar_lea.vmem %s3317_s9, 64  ;;  %s2999_s27 = smov [#allocation2]  }
  0xbd   : > { %p2897_p12 = scmp.ne.s32.totalorder %s3317_s9, %s2896_s5  ;;  %s2901_s17 = sshll.u32 %s2999_s27, 4  ;;  %s2902_s17 = int_to_ptr.vmem [resolvable:$false] %s2901_s17 }
  0xbe   : > { %s2903_s22 = scalar_lea.vmem %s2902_s17, 128  ;;  %p2904_p4 = scmp.lt.s32.totalorder %s3317_s9, %s2902_s17 }
  0xbf   : > { %p2899_p13 = pnand %p2897_p12, %p2883_p8  ;;  %p2905_p1 = scmp.lt.s32.totalorder %s2903_s22, %s2896_s5 }
  0xc1   : > { %p2900_p10 = pneg %p2899_p13  ;;  %p2906_p3 = por %p2905_p1, %p2904_p4 }
  0xc3   : > { %p2907_p2 = pnand %p2906_p3, %p2900_p10 }
  0xc5   : > { %2910 = shalt.err (!%p2907_p2)
}
  0xc6   : > { %2588 = dma.hbm_to_vmem [thread:$0]  (!%p3321_p11), %s3315_s13, 64, %s3317_s9, %s497_s23  }
  0xc7   : > { %p3745_p0 = scmp.ne.s32.totalorder %s3734_s25, 0 }
  0xc8   : > { %s3353_s30 = sand.u32 (!%p3745_p0), 1, %s2981_s19  }
  0xc9   : > { %524 = sbr.rel (%p3745_p0) target bundleno = 4575 (0x11df), region = 80  ;;  %s3721_s29 = sshll.u32 (!%p3745_p0), %s3353_s30, 2 }
  0xca   : > { %s527_s1 = scalar_lea.sflag (!%p3745_p0), [#allocation3], %s3353_s30  ;;  %s530_s16 = scalar_lea.vmem (!%p3745_p0), [#allocation2], %s3721_s29 }
  0xd0   : > { %2956 = dma.done.wait (%p3296_p6), %s527_s1, 64  }
  0xd1   : > { %2958 = vsyncadd (%p3296_p6), %s527_s1, 4294967232  ;;  %p3746_p4 = scmp.eq.s32.totalorder %s3113_s24, 0 }
  0xd3   : > { %2960 = dma.done.wait (%p3746_p4), [#allocation6], 272   ;;  %p3747_p10 = pmov %p3746_p4 }
  0xd4   : > { %p3748_p11 = pmov %p3746_p4 }
  0xd5   : > { %2962 = vsyncadd (%p3747_p10), [#allocation6], 4294967024 }
  0xd6   : > { %2964 = dma.done.wait (%p3748_p11), [#allocation9], 272   ;;  %p3749_p8 = pmov %p3746_p4 }
  0xd7   : > { %p3750_p5 = pmov %p3746_p4 }
  0xd8   : > { %2966 = vsyncadd (%p3749_p8), [#allocation9], 4294967024 }
  0xd9   : > { %2968 = dma.done.wait (%p3750_p5), [#allocation12], 272   ;;  %p3751_p7 = pmov %p3746_p4 }
  0xda   : > { %v3000_v0 = vmov 0.0   ;;  %vm3001_vm0 = vmmov 0   ;;  %s3752_s2 = sld [smem:[#allocation22_spill]]  ;;  %vm639_vm1 = vcmask 261120   ;;  %v3388_v3 = vld [vmem:[%s530_s16] sm:$0xf]  ;;  %v683_v27 = vlaneseq }
  0xdb   : > { %2970 = vsyncadd (%p3751_p7), [#allocation12], 4294967024  ;;  %2382 = vmatprep.subr.bf16.mxu1 %v3000_v0  ;;  %2386 = vmatprep.mubr.msk.bf16.mxu1 %vm3001_vm0, %v3000_v0  ;;  %v2271_v4 = vld [vmem:[%s3700_s3] ss:$0 sm:$0xff]  ;;  %s3002_s5 = smov 104   ;;  %s3003_s27 = smov 120  }
  0xdc   : > { %2396 = vmatprep.subr.bf16.mxu0 %v3000_v0  ;;  %2398 = vmatprep.mubr.msk.bf16.mxu0 %vm3001_vm0, %v3000_v0  ;;  %s3004_s17 = smov 96   ;;  %s3005_s22 = smov 112   ;;  %vm708_vm2 = vcmask 64512   ;;  %v684_v28 = vshrl.u32 %v683_v27, 7  ;;  %v686_v29 = vand.u32 127, %v683_v27  ;;  %vm952_vm4 = vcmask 1043456  }
  0xdd   : > { %v3006_v30 = vmov -1e+09   ;;  %s3007_s1 = smov 64   ;;  %s3753_s12 = sld [smem:[#allocation23_spill]]  ;;  %vm1153_vm5 = vcmask 130048   ;;  %vm1155_vm6 = vcmask 195584  }
  0xde   : > { %vm687_vm3 = vcmp.ge.s32.totalorder %v684_v28, %v686_v29  ;;  %s3008_s26 = smov 8   ;;  %s3009_s23 = smov 16   ;;  %vm2023_vm7 = vcmask 523264   ;;  %vm2094_vm8 = vcmask 257024  }
  0xdf   : > { %v688_v31 = vsel %vm687_vm3, 0.0, %v3006_v30  ;;  %p606_p6 = scmp.lt.s32.totalorder %s3113_s24, 1  ;;  %s3754_s29 = sld [smem:[#allocation21_spill]] }
  0xe0   : > { %v2658_v1 = vld [vmem:[%s3752_s2] sm:$0xff]   ;;  %v2659_v2 = vld [vmem:[%s3752_s2 + $0x8] sm:$0xff]   ;;  %p3762_p12 = scmp.ne.s32.totalorder %s3741_s4, 0 }
  0xe1   : > { %2383 = vmatpush3.bf16.msra.mxu1 %v2658_v1  ;;  %s607_s16 = scalar_select %p606_p6, %s3113_s24, 1 }
  0xe2   : > { %2384 = vmatprep.subr.bf16.mxu1 %v3000_v0 }
  0xe3   : > { %s2326_s25 = sshll.u32 %s607_s16, 3  ;;  %s3755_s16 = sld [smem:[#allocation28_spill]] }
  0xe5   : > { %2385 = vmatpush3.bf16.msra.mxu1 %v2659_v2 }
  0xe6   : > { %2390 = vmatprep.subr.bf16.mxu1 %v3000_v0 }
  0xe8   : > { %2387 = vmatmul.mubr.msk.bf16.vlgmr.msra.gmra.mrb[0].mxu1 %vm639_vm1, %v3388_v3 }
  0xe9   : > { %2392 = vmatprep.mubr.msk.bf16.mxu1 %vm3001_vm0, %v3000_v0 }
 0x1bb   : > { %v677_v5 = vpop.f32.mrb[0].mxu1 }
 0x1bc   : > { %v678_v6 = vadd.f32 %v2271_v4, %v677_v5  ;;  %v2388_v7 = vpop.f32.mrb[1].mxu1 }
 0x1bd   : > { %v680_v8 = vpop.f32.mrb[2].mxu1 }
 0x1be   : > { %v3398_v9 = vpack.c.bf16 %v678_v6, %v678_v6  ;;  %v2389_v10 = vpop.f32.mrb[3].mxu1  ;;  %v689_v11 = vmul.f32 0.35355338, %v678_v6 }
 0x1c0   : > { %704 = vrot.lane.b32.xlu1 %v3398_v9, %s3002_s5  ;;  %700 = vrot.lane.b32.xlu0 %v3398_v9, %s3003_s27  ;;  %v690_v14 = vpack.c.bf16 %v689_v11, %v689_v11 }
 0x1c4   : > { %706 = vrot.lane.b32.xlu1 %v3398_v9, %s3004_s17  ;;  %702 = vrot.lane.b32.xlu0 %v3398_v9, %s3005_s22 }
 0x232   : > { %v3408_v12 = vpop.permute.xlu1 %704  ;;  %v3410_v13 = vpop.permute.xlu0 %700 }
 0x233   : > { %755 = vrot.lane.b32.xlu0 %v3410_v13, %s3004_s17 }
 0x236   : > { %v707_v15 = vpop.permute.xlu1 %706  ;;  %v3414_v16 = vpop.permute.xlu0 %702 }
 0x237   : > { %v713_v17 = vsel %vm708_vm2, %v707_v15, 0  ;;  %803 = vrot.lane.b32.xlu1 %v3414_v16, %s3004_s17  ;;  %692 = vrot.lane.b32.xlu0 %v690_v14, %s3003_s27 }
 0x238   : > { %2391 = vmatpush3.bf16.xpose.msra.mxu1 %v713_v17 }
 0x239   : > { %2402 = vmatprep.subr.bf16.mxu1 %v3000_v0 }
 0x23b   : > { %851 = vrot.lane.b32.xlu1 %v3408_v12, %s3004_s17  ;;  %694 = vrot.lane.b32.xlu0 %v690_v14, %s3005_s22 }
 0x23f   : > { %696 = vrot.lane.b32.xlu1 %v690_v14, %s3002_s5  ;;  %2393 = vmatmul.mubr.msk.bf16.vlgmr.msra.gmra.mrb[4].mxu1 %vm708_vm2, %v690_v14 }
 0x240   : > { %2404 = vmatprep.mubr.msk.bf16.mxu1 %vm3001_vm0, %v3000_v0 }
 0x2a5   : > { %v756_v18 = vpop.permute.xlu0 %755 }
 0x2a6   : > { %v761_v19 = vsel %vm708_vm2, %v756_v18, 0 }
 0x2a7   : > { %2397 = vmatpush3.bf16.xpose.msra.mxu0 %v761_v19 }
 0x2a8   : > { %2408 = vmatprep.subr.bf16.mxu0 %v3000_v0 }
 0x2a9   : > { %v804_v20 = vpop.permute.xlu1 %803  ;;  %v693_v22 = vpop.permute.xlu0 %692 }
 0x2aa   : > { %v809_v21 = vsel %vm708_vm2, %v804_v20, 0 }
 0x2ab   : > { %2403 = vmatpush3.bf16.xpose.msra.mxu1 %v809_v21 }
 0x2ac   : > { %2414 = vmatprep.subr.bf16.mxu1 %v3000_v0 }
 0x2ad   : > { %v852_v23 = vpop.permute.xlu1 %851  ;;  %v695_v25 = vpop.permute.xlu0 %694 }
 0x2ae   : > { %v857_v24 = vsel %vm708_vm2, %v852_v23, 0  ;;  %2399 = vmatmul.mubr.msk.bf16.vlgmr.msra.gmra.mrb[0].mxu0 %vm708_vm2, %v693_v22 }
 0x2af   : > { %2409 = vmatpush3.bf16.xpose.msra.mxu0 %v857_v24  ;;  %2410 = vmatprep.mubr.msk.bf16.mxu0 %vm3001_vm0, %v3000_v0 }
 0x2b0   : > { %2420 = vmatprep.subr.bf16.mxu0 %v3000_v0 }
 0x2b1   : > { %v697_v26 = vpop.permute.xlu1 %696 }
 0x2b2   : > { %2405 = vmatmul.mubr.msk.bf16.vlgmr.msra.gmra.mrb[8].mxu1 %vm708_vm2, %v695_v25 }
 0x2b3   : > { %2416 = vmatprep.mubr.msk.bf16.mxu1 %vm3001_vm0, %v3000_v0 }
 0x2b6   : > { %2411 = vmatmul.mubr.msk.bf16.vlgmr.msra.gmra.mrb[4].mxu0 %vm708_vm2, %v697_v26 }
 0x2b7   : > { %2422 = vmatprep.mubr.msk.bf16.mxu0 %vm3001_vm0, %v3000_v0 }
 0x312   : > { %v749_v32 = vpop.f32.mrb[4].mxu1 }
 0x313   : > { %v750_v33 = vadd.f32 %v749_v32, %v688_v31  ;;  %v2394_v34 = vpop.f32.mrb[5].mxu1 }
 0x314   : > { %v752_v35 = vpop.f32.mrb[6].mxu1 }
 0x315   : > { %v2395_v36 = vpop.f32.mrb[7].mxu1  ;;  %v899_v37 = vsel %vm708_vm2, %v750_v33, -inf }
 0x316   : > { %900 = vmax.xlane.f32.xlu0 %v899_v37 }
 0x381   : > { %v797_v38 = vpop.f32.mrb[0].mxu0 }
 0x382   : > { %v798_v39 = vadd.f32 %v797_v38, %v688_v31  ;;  %v2400_v40 = vpop.f32.mrb[1].mxu0 }
 0x383   : > { %v800_v41 = vpop.f32.mrb[2].mxu0 }
 0x384   : > { %v2401_v42 = vpop.f32.mrb[3].mxu0  ;;  %v902_v43 = vsel %vm708_vm2, %v798_v39, -inf }
 0x385   : > { %903 = vmax.xlane.f32.xlu1 %v902_v43  ;;  %v845_v44 = vpop.f32.mrb[8].mxu1  ;;  %v2660_v42 = vld [vmem:[%s3753_s12] sm:$0xff]   ;;  %v2661_v43 = vld [vmem:[%s3753_s12 + $0x8] sm:$0xff]  }
 0x386   : > { %v846_v45 = vadd.f32 %v845_v44, %v688_v31  ;;  %v2406_v46 = vpop.f32.mrb[9].mxu1 }
 0x387   : > { %v848_v47 = vpop.f32.mrb[10].mxu1 }
 0x388   : > { %v2407_v48 = vpop.f32.mrb[11].mxu1  ;;  %v905_v49 = vsel %vm708_vm2, %v846_v45, -inf }
 0x389   : > { %v893_v50 = vpop.f32.mrb[4].mxu0  ;;  %906 = vmax.xlane.f32.xlu0 %v905_v49 }
 0x38a   : > { %v894_v51 = vadd.f32 %v893_v50, %v688_v31  ;;  %v2412_v52 = vpop.f32.mrb[5].mxu0 }
 0x38b   : > { %v896_v53 = vpop.f32.mrb[6].mxu0 }
 0x38c   : > { %v2413_v54 = vpop.f32.mrb[7].mxu0  ;;  %v908_v55 = vsel %vm708_vm2, %v894_v51, -inf }
 0x38d   : > { %909 = vmax.xlane.f32.xlu0 %v908_v55 }
 0x396   : > { %947 = vrot.lane.b32.xlu1 %v3398_v9, %s3007_s1 }
 0x3a3   : > { %v901_v56 = vpop.xlane.xlu0 %900 }
 0x3a4   : > { %v911_v57 = vsub.f32 %v750_v33, %v901_v56 }
 0x3a6   : > { %v915_v58 = vmul.f32 1.442695, %v911_v57 }
 0x3a8   : > { %2675 = vpow2.f32 %v915_v58 }
 0x3b2   : > { %v2676_v59 = vpop.eup %2675 }
 0x3b3   : > { %v923_v60 = vsel %vm708_vm2, %v2676_v59, 0.0 }
 0x3ba   : > { %924 = vadd.xlane.f32.xlu1 %v923_v60 }
 0x412   : > { %v904_v61 = vpop.xlane.xlu1 %903 }
 0x413   : > { %v912_v62 = vsub.f32 %v798_v39, %v904_v61 }
 0x415   : > { %v917_v63 = vmul.f32 1.442695, %v912_v62 }
 0x416   : > { %v948_v1 = vpop.permute.xlu1 %947  ;;  %v907_v2 = vpop.xlane.xlu0 %906 }
 0x417   : > { %2677 = vpow2.f32 %v917_v63  ;;  %v954_v4 = vsel %vm952_vm4, %v948_v1, 0  ;;  %v913_v5 = vsub.f32 %v846_v45, %v907_v2  ;;  %v615_v63 = vunpack.c.l.bf16 %v3388_v3  ;;  %v2663_v3 = vld [vmem:[#allocation8 + $0x8] sm:$0xff]  }
 0x418   : > { %2415 = vmatpush3.bf16.msra.mxu1 %v954_v4 }
 0x419   : > { %v919_v6 = vmul.f32 1.442695, %v913_v5  ;;  %2426 = vmatprep.subr.bf16.mxu1 %v3000_v0 }
 0x41a   : > { %v910_v7 = vpop.xlane.xlu0 %909 }
 0x41b   : > { %2679 = vpow2.f32 %v919_v6  ;;  %v914_v8 = vsub.f32 %v894_v51, %v910_v7 }
 0x41d   : > { %v921_v9 = vmul.f32 1.442695, %v914_v8 }
 0x41f   : > { %2681 = vpow2.f32 %v921_v9 }
 0x421   : > { %v2678_v10 = vpop.eup %2677 }
 0x422   : > { %v926_v11 = vsel %vm708_vm2, %v2678_v10, 0.0 }
 0x423   : > { %927 = vadd.xlane.f32.xlu0 %v926_v11 }
 0x425   : > { %v2680_v14 = vpop.eup %2679 }
 0x426   : > { %v929_v15 = vsel %vm708_vm2, %v2680_v14, 0.0 }
 0x427   : > { %930 = vadd.xlane.f32.xlu1 %v929_v15  ;;  %v2662_v15 = vld [vmem:[#allocation8] sm:$0xff]  }
 0x429   : > { %v2682_v17 = vpop.eup %2681 }
 0x42a   : > { %v932_v18 = vsel %vm708_vm2, %v2682_v17, 0.0 }
 0x42b   : > { %933 = vadd.xlane.f32.xlu0 %v932_v18  ;;  %v2665_v18 = vld [vmem:[#allocation5] sm:$0xff]  }
 0x438   : > { %1044 = vrot.lane.b32.xlu1 %v3414_v16, %s3007_s1 }
 0x43c   : > { %1092 = vrot.lane.b32.xlu1 %v3408_v12, %s3007_s1 }
 0x441   : > { %996 = vrot.lane.b32.xlu0 %v3410_v13, %s3007_s1  ;;  %s3722_s1 = smov 24  }
 0x447   : > { %v925_v19 = vpop.xlane.xlu1 %924 }
 0x448   : > { %2683 = vrcp.f32 %v925_v19  ;;  %v2666_v19 = vld [vmem:[#allocation5 + $0x8] sm:$0xff]  }
 0x452   : > { %v2684_v20 = vpop.eup %2683 }
 0x453   : > { %v939_v21 = vmul.f32 %v2684_v20, %v2676_v59 }
 0x455   : > { %v943_v22 = vpack.c.bf16 %v939_v21, %v939_v21 }
 0x457   : > { %2417 = vmatmul.mubr.msk.bf16.vlgmr.msra.gmra.mrb[12].mxu1 %vm708_vm2, %v943_v22 }
 0x458   : > { %2428 = vmatprep.mubr.msk.bf16.mxu1 %vm3001_vm0, %v3000_v0 }
 0x4b0   : > { %v928_v23 = vpop.xlane.xlu0 %927 }
 0x4b1   : > { %2685 = vrcp.f32 %v928_v23 }
 0x4b4   : > { %v931_v24 = vpop.xlane.xlu1 %930 }
 0x4b5   : > { %2687 = vrcp.f32 %v931_v24  ;;  %v2286_v24 = vld [vmem:[%s3755_s16] ss:$0 sm:$0xff] }
 0x4b8   : > { %v1045_v16 = vpop.permute.xlu1 %1044  ;;  %v934_v25 = vpop.xlane.xlu0 %933 }
 0x4b9   : > { %v1050_v12 = vsel %vm952_vm4, %v1045_v16, 0  ;;  %2689 = vrcp.f32 %v934_v25  ;;  %v2287_v25 = vld [vmem:[%s3755_s16 + $0x1] ss:$0 sm:$0xff] }
 0x4ba   : > { %2427 = vmatpush3.bf16.msra.mxu1 %v1050_v12 }
 0x4bb   : > { %v2686_v13 = vpop.eup %2685  ;;  %2438 = vmatprep.subr.bf16.mxu1 %v3000_v0 }
 0x4bc   : > { %v940_v26 = vmul.f32 %v2686_v13, %v2678_v10  ;;  %v997_v27 = vpop.permute.xlu0 %996  ;;  %v1093_v29 = vpop.permute.xlu1 %1092 }
 0x4bd   : > { %v1002_v28 = vsel %vm952_vm4, %v997_v27, 0  ;;  %v1098_v33 = vsel %vm952_vm4, %v1093_v29, 0  ;;  %v2292_v27 = vld [vmem:[#allocation10] ss:$0 sm:$0xff] }
 0x4be   : > { %2421 = vmatpush3.bf16.msra.mxu0 %v1002_v28  ;;  %v944_v30 = vpack.c.bf16 %v940_v26, %v940_v26 }
 0x4bf   : > { %v2688_v31 = vpop.eup %2687  ;;  %2432 = vmatprep.subr.bf16.mxu0 %v3000_v0 }
 0x4c0   : > { %v941_v32 = vmul.f32 %v2688_v31, %v2680_v14 }
 0x4c1   : > { %2423 = vmatmul.mubr.msk.bf16.vlgmr.msra.gmra.mrb[8].mxu0 %vm708_vm2, %v944_v30 }
 0x4c2   : > { %2433 = vmatpush3.bf16.msra.mxu0 %v1098_v33  ;;  %v945_v34 = vpack.c.bf16 %v941_v32, %v941_v32  ;;  %2434 = vmatprep.mubr.msk.bf16.mxu0 %vm3001_vm0, %v3000_v0 }
 0x4c3   : > { %v2690_v35 = vpop.eup %2689  ;;  %2446 = vmatprep.subr.bf16.mxu0 %v3000_v0 }
 0x4c4   : > { %v942_v36 = vmul.f32 %v2690_v35, %v2682_v17  ;;  %2429 = vmatmul.mubr.msk.bf16.vlgmr.msra.gmra.mrb[16].mxu1 %vm708_vm2, %v945_v34 }
 0x4c5   : > { %2442 = vmatprep.mubr.msk.bf16.mxu1 %vm3001_vm0, %v3000_v0  ;;  %2439 = vmatpush3.bf16.msra.mxu1 %v2660_v42 }
 0x4c6   : > { %v946_v37 = vpack.c.bf16 %v942_v36, %v942_v36  ;;  %2440 = vmatprep.subr.bf16.mxu1 %v3000_v0 }
 0x4c9   : > { %2435 = vmatmul.mubr.msk.bf16.vlgmr.msra.gmra.mrb[12].mxu0 %vm708_vm2, %v946_v37  ;;  %2441 = vmatpush3.bf16.msra.mxu1 %v2661_v43 }
 0x4ca   : > { %2450 = vmatprep.mubr.msk.bf16.mxu0 %vm3001_vm0, %v3000_v0  ;;  %2454 = vmatprep.subr.bf16.mxu1 %v3000_v0 }
 0x4cb   : > { %2447 = vmatpush3.bf16.msra.mxu0 %v2665_v18 }
 0x4cc   : > { %2448 = vmatprep.subr.bf16.mxu0 %v3000_v0 }
 0x4cf   : > { %2449 = vmatpush3.bf16.msra.mxu0 %v2666_v19 }
 0x4d0   : > { %2462 = vmatprep.subr.bf16.mxu0 %v3000_v0 }
 0x52a   : > { %v990_v38 = vpop.f32.mrb[12].mxu1 }
 0x52b   : > { %v2418_v39 = vpop.f32.mrb[13].mxu1 }
 0x52c   : > { %v993_v40 = vpop.f32.mrb[14].mxu1 }
 0x52d   : > { %v2419_v41 = vpop.f32.mrb[15].mxu1 }
 0x594   : > { %v1038_v44 = vpop.f32.mrb[8].mxu0 }
 0x595   : > { %1141 = vrot.lane.b32.xlu0 %v1038_v44, %s3008_s26  ;;  %v2424_v45 = vpop.f32.mrb[9].mxu0 }
 0x596   : > { %v1041_v46 = vpop.f32.mrb[10].mxu0 }
 0x597   : > { %v2425_v47 = vpop.f32.mrb[11].mxu0  ;;  %v1086_v48 = vpop.f32.mrb[16].mxu1 }
 0x598   : > { %1145 = vrot.lane.b32.xlu1 %v1086_v48, %s3009_s23  ;;  %v2430_v49 = vpop.f32.mrb[17].mxu1 }
 0x599   : > { %v1089_v50 = vpop.f32.mrb[18].mxu1 }
 0x59a   : > { %v2431_v51 = vpop.f32.mrb[19].mxu1 }
 0x59c   : > { %v1134_v52 = vpop.f32.mrb[12].mxu0 }
 0x59d   : > { %1149 = vrot.lane.b32.xlu0 %v1134_v52, %s3722_s1  ;;  %v2436_v53 = vpop.f32.mrb[13].mxu0  ;;  %s610_s1 = scalar_lea.vmem %s3754_s29, %s2326_s25  ;;  %s3757_s29 = smov 24  }
 0x59e   : > { %v1137_v54 = vpop.f32.mrb[14].mxu0  ;;  %v2664_v17 = vld [vmem:[%s610_s1] sm:$0xff]   ;;  %s3758_s1 = sld [smem:[#allocation26_spill]]  ;;  %s3760_s25 = sshll.u32 %s3353_s30, 2 }
 0x59f   : > { %v2437_v55 = vpop.f32.mrb[15].mxu0  ;;  %s605_s13 = scalar_lea.vmem [#allocation14], %s3760_s25 }
 0x607   : > { %v1142_v56 = vpop.permute.xlu0 %1141 }
 0x608   : > { %v1152_v58 = vsel %vm708_vm2, %v990_v38, %v1142_v56  ;;  %v2288_v38 = vld [vmem:[#allocation7] ss:$0 sm:$0xff] }
 0x60a   : > { %v1146_v57 = vpop.permute.xlu1 %1145 }
 0x60b   : > { %v1154_v59 = vsel %vm1153_vm5, %v1152_v58, %v1146_v57 }
 0x60f   : > { %v1150_v60 = vpop.permute.xlu0 %1149 }
 0x610   : > { %v1156_v61 = vsel %vm1155_vm6, %v1154_v59, %v1150_v60 }
 0x611   : > { %v1157_v62 = vpack.c.bf16 %v1156_v61, %v1156_v61 }
 0x613   : > { %2443 = vmatmul.mubr.msk.bf16.vlgmr.msra.gmra.mrb[20].mxu1 %vm639_vm1, %v1157_v62 }
 0x614   : > { %2458 = vmatprep.mubr.msk.bf16.mxu1 %vm3001_vm0, %v3000_v0  ;;  %2455 = vmatpush3.bf16.msra.mxu1 %v2662_v15 }
 0x615   : > { %2456 = vmatprep.subr.bf16.mxu1 %v3000_v0 }
 0x618   : > { %2457 = vmatpush3.bf16.msra.mxu1 %v2663_v3 }
 0x619   : > { %2468 = vmatprep.subr.bf16.mxu1 %v3000_v0 }
 0x61b   : > { %2459 = vmatmul.mubr.msk.bf16.vlgmr.msra.gmra.mrb[24].mxu1 %vm639_vm1, %v2664_v17 }
 0x61c   : > { %2470 = vmatprep.mubr.msk.bf16.mxu1 %vm3001_vm0, %v3000_v0 }
 0x6e6   : > { %v1211_v1 = vpop.f32.mrb[20].mxu1 }
 0x6e7   : > { %v1212_v2 = vadd.f32 %v1211_v1, %v615_v63  ;;  %v2444_v4 = vpop.f32.mrb[21].mxu1 }
 0x6e8   : > { %v1214_v5 = vpop.f32.mrb[22].mxu1 }
 0x6e9   : > { %v2445_v6 = vpop.f32.mrb[23].mxu1  ;;  %v1219_v7 = vsel %vm639_vm1, %v1212_v2, 0.0 }
 0x6ea   : > { %1220 = vadd.xlane.f32.xlu1 %v1219_v7 }
 0x6ee   : > { %v1375_v28 = vpop.f32.mrb[24].mxu1 }
 0x6ef   : > { %v1376_v29 = vadd.f32 %v2292_v27, %v1375_v28  ;;  %v2460_v30 = vpop.f32.mrb[25].mxu1 }
 0x6f0   : > { %v1378_v31 = vpop.f32.mrb[26].mxu1 }
 0x6f1   : > { %v1379_v32 = vadd.f32 %v2292_v27, %v1378_v31  ;;  %v2461_v33 = vpop.f32.mrb[27].mxu1 }
 0x6f3   : > { %v3524_v34 = vpack.c.bf16 %v1379_v32, %v1376_v29 }
 0x6f5   : > { %v1403_v35 = vsel %vm708_vm2, %v3524_v34, 0 }
 0x6fb   : > { %1395 = vrot.lane.b32.xlu1 %v3524_v34, %s3005_s22 }
 0x777   : > { %v1221_v8 = vpop.xlane.xlu1 %1220 }
 0x778   : > { %v1223_v9 = vmul.f32 0.03125, %v1221_v8 }
 0x77a   : > { %v1224_v10 = vsub.f32 %v1212_v2, %v1223_v9 }
 0x77b   : > { %v3537_v45 = vpop.permute.xlu1 %1395 }
 0x77c   : > { %v1225_v11 = vmul.f32 %v1224_v10, %v1224_v10  ;;  %v1495_v47 = vsel %vm708_vm2, %v3537_v45, 0 }
 0x77e   : > { %v1226_v14 = vsel %vm639_vm1, %v1225_v11, 0.0 }
 0x77f   : > { %1227 = vadd.xlane.f32.xlu0 %v1226_v14 }
 0x795   : > { %1393 = vrot.lane.b32.xlu0 %v3524_v34, %s3003_s27 }
 0x799   : > { %1397 = vrot.lane.b32.xlu0 %v3524_v34, %s3002_s5 }
 0x80c   : > { %v1228_v20 = vpop.xlane.xlu0 %1227 }
 0x80d   : > { %v1229_v21 = vmul.f32 0.03125, %v1228_v20 }
 0x80f   : > { %v1230_v22 = vadd.f32 1e-05, %v1229_v21 }
 0x810   : > { %v1394_v36 = vpop.permute.xlu0 %1393 }
 0x811   : > { %2691 = vrsqrt.f32 %v1230_v22  ;;  %v1449_v37 = vsel %vm708_vm2, %v1394_v36, 0 }
 0x812   : > { %2469 = vmatpush3.bf16.xpose.msra.mxu1 %v1449_v37 }
 0x813   : > { %2480 = vmatprep.subr.bf16.mxu1 %v3000_v0 }
 0x814   : > { %v3548_v48 = vpop.permute.xlu0 %1397 }
 0x815   : > { %v1541_v50 = vsel %vm708_vm2, %v3548_v48, 0 }
 0x81b   : > { %v2692_v23 = vpop.eup %2691 }
 0x81c   : > { %v1232_v16 = vmul.f32 %v2692_v23, %v1224_v10 }
 0x81e   : > { %v1237_v12 = vmul.f32 %v2286_v24, %v1232_v16 }
 0x820   : > { %v3517_v13 = vadd.f32 %v2287_v25, %v1237_v12 }
 0x822   : > { %v1243_v26 = vpack.c.bf16 %v3517_v13, %v3517_v13 }
 0x824   : > { %2451 = vmatmul.mubr.msk.bf16.vlgmr.msra.gmra.mrb[16].mxu0 %vm639_vm1, %v1243_v26 }
 0x825   : > { %2464 = vmatprep.mubr.msk.bf16.mxu0 %vm3001_vm0, %v3000_v0  ;;  %2463 = vmatpush3.bf16.xpose.msra.mxu0 %v1403_v35 }
 0x826   : > { %2474 = vmatprep.subr.bf16.mxu0 %v3000_v0 }
 0x8f7   : > { %v1304_v39 = vpop.f32.mrb[16].mxu0 }
 0x8f8   : > { %v1305_v40 = vadd.f32 %v2288_v38, %v1304_v39  ;;  %v2452_v41 = vpop.f32.mrb[17].mxu0 }
 0x8f9   : > { %v1307_v42 = vpop.f32.mrb[18].mxu0 }
 0x8fa   : > { %v1382_v43 = vmul.f32 0.35355338, %v1305_v40  ;;  %v2453_v44 = vpop.f32.mrb[19].mxu0 }
 0x8fc   : > { %v1383_v46 = vpack.c.bf16 %v1382_v43, %v1382_v43 }
 0x8fe   : > { %1389 = vrot.lane.b32.xlu0 %v1383_v46, %s3002_s5  ;;  %1385 = vrot.lane.b32.xlu1 %v1383_v46, %s3003_s27  ;;  %s3759_s27 = sld [smem:[#allocation27_spill]]  ;;  %s2110_s5 = sshll.u32 %s605_s13, 4  ;;  %s3655_s5 = int_to_ptr.vmem [resolvable:$true] %s2110_s5 }
 0x8ff   : > { %2465 = vmatmul.mubr.msk.bf16.vlgmr.msra.gmra.mrb[20].mxu0 %vm708_vm2, %v1383_v46  ;;  %s2911_s9 = scalar_lea.vmem %s3655_s5, 64 }
 0x900   : > { %2475 = vmatpush3.bf16.xpose.msra.mxu0 %v1495_v47  ;;  %2476 = vmatprep.mubr.msk.bf16.mxu0 %vm3001_vm0, %v3000_v0  ;;  %p2912_p9 = scmp.ne.s32.totalorder %s3655_s5, %s2911_s9 }
 0x901   : > { %2486 = vmatprep.subr.bf16.mxu0 %v3000_v0 }
 0x902   : > { %1387 = vrot.lane.b32.xlu1 %v1383_v46, %s3005_s22  ;;  %s2097_s22 = scalar_lea.sflag [#allocation4], %s3353_s30  ;;  %p2913_p13 = pnand %p2912_p9, %p3762_p12 }
 0x904   : > { %p2914_p1 = pneg %p2913_p13 }
 0x970   : > { %v1386_v49 = vpop.permute.xlu1 %1385  ;;  %v1390_v52 = vpop.permute.xlu0 %1389 }
 0x971   : > { %2471 = vmatmul.mubr.msk.bf16.vlgmr.msra.gmra.mrb[28].mxu1 %vm708_vm2, %v1386_v49 }
 0x972   : > { %2481 = vmatpush3.bf16.xpose.msra.mxu1 %v1541_v50  ;;  %2482 = vmatprep.mubr.msk.bf16.mxu1 %vm3001_vm0, %v3000_v0 }
 0x973   : > { %2492 = vmatprep.subr.bf16.mxu1 %v3000_v0 }
 0x974   : > { %v1388_v51 = vpop.permute.xlu1 %1387 }
 0x975   : > { %2477 = vmatmul.mubr.msk.bf16.vlgmr.msra.gmra.mrb[24].mxu0 %vm708_vm2, %v1388_v51 }
 0x976   : > { %2488 = vmatprep.mubr.msk.bf16.mxu0 %vm3001_vm0, %v3000_v0 }
 0x979   : > { %2483 = vmatmul.mubr.msk.bf16.vlgmr.msra.gmra.mrb[32].mxu1 %vm708_vm2, %v1390_v52 }
 0x97a   : > { %2494 = vmatprep.mubr.msk.bf16.mxu1 %vm3001_vm0, %v3000_v0 }
 0x9d2   : > { %v1439_v53 = vpop.f32.mrb[20].mxu0 }
 0x9d3   : > { %v2466_v54 = vpop.f32.mrb[21].mxu0  ;;  %v1583_v55 = vsel %vm1153_vm5, %v1439_v53, -inf }
 0x9d4   : > { %1584 = vmax.xlane.f32.xlu1 %v1583_v55  ;;  %v1442_v56 = vpop.f32.mrb[22].mxu0 }
 0x9d5   : > { %v2467_v57 = vpop.f32.mrb[23].mxu0 }
 0xa44   : > { %v1485_v58 = vpop.f32.mrb[28].mxu1 }
 0xa45   : > { %v2472_v59 = vpop.f32.mrb[29].mxu1  ;;  %v1586_v60 = vsel %vm1153_vm5, %v1485_v58, -inf }
 0xa46   : > { %1587 = vmax.xlane.f32.xlu0 %v1586_v60  ;;  %v1488_v61 = vpop.f32.mrb[30].mxu1 }
 0xa47   : > { %v2473_v62 = vpop.f32.mrb[31].mxu1 }
 0xa48   : > { %v1531_v63 = vpop.f32.mrb[24].mxu0 }
 0xa49   : > { %v2478_v1 = vpop.f32.mrb[25].mxu0  ;;  %v1589_v2 = vsel %vm1153_vm5, %v1531_v63, -inf }
 0xa4a   : > { %1590 = vmax.xlane.f32.xlu0 %v1589_v2  ;;  %v1534_v4 = vpop.f32.mrb[26].mxu0 }
 0xa4b   : > { %v2479_v5 = vpop.f32.mrb[27].mxu0 }
 0xa4c   : > { %v1577_v6 = vpop.f32.mrb[32].mxu1 }
 0xa4d   : > { %v2484_v7 = vpop.f32.mrb[33].mxu1  ;;  %v1592_v8 = vsel %vm1153_vm5, %v1577_v6, -inf }
 0xa4e   : > { %1593 = vmax.xlane.f32.xlu1 %v1592_v8  ;;  %v1580_v9 = vpop.f32.mrb[34].mxu1 }
 0xa4f   : > { %v2485_v10 = vpop.f32.mrb[35].mxu1 }
 0xa5f   : > { %1677 = vrot.lane.b32.xlu1 %v1394_v36, %s3004_s17 }
 0xa60   : > { %1631 = vrot.lane.b32.xlu0 %v3524_v34, %s3004_s17 }
 0xa61   : > { %v1585_v11 = vpop.xlane.xlu1 %1584 }
 0xa62   : > { %v1595_v14 = vsub.f32 %v1439_v53, %v1585_v11 }
 0xa64   : > { %v1599_v15 = vmul.f32 1.442695, %v1595_v14 }
 0xa66   : > { %2693 = vpow2.f32 %v1599_v15 }
 0xa70   : > { %v2694_v3 = vpop.eup %2693 }
 0xa71   : > { %v1607_v17 = vsel %vm1153_vm5, %v2694_v3, 0.0 }
 0xa7f   : > { %1608 = vadd.xlane.f32.xlu0 %v1607_v17 }
 0xad3   : > { %v1588_v18 = vpop.xlane.xlu0 %1587 }
 0xad4   : > { %v1596_v19 = vsub.f32 %v1485_v58, %v1588_v18 }
 0xad6   : > { %v1601_v20 = vmul.f32 1.442695, %v1596_v19 }
 0xad7   : > { %v1591_v21 = vpop.xlane.xlu0 %1590 }
 0xad8   : > { %2695 = vpow2.f32 %v1601_v20  ;;  %v1597_v22 = vsub.f32 %v1531_v63, %v1591_v21 }
 0xada   : > { %v1603_v23 = vmul.f32 1.442695, %v1597_v22 }
 0xadb   : > { %v1632_v24 = vpop.permute.xlu0 %1631  ;;  %v1594_v16 = vpop.xlane.xlu1 %1593 }
 0xadc   : > { %2697 = vpow2.f32 %v1603_v23  ;;  %v1598_v25 = vsub.f32 %v1577_v6, %v1594_v16  ;;  %2487 = vmatpush3.bf16.msra.mxu0 %v1632_v24 }
 0xadd   : > { %2498 = vmatprep.subr.bf16.mxu0 %v3000_v0 }
 0xade   : > { %v1605_v12 = vmul.f32 1.442695, %v1598_v25 }
 0xadf   : > { %v1678_v26 = vpop.permute.xlu1 %1677 }
 0xae0   : > { %2699 = vpow2.f32 %v1605_v12  ;;  %2493 = vmatpush3.bf16.msra.mxu1 %v1678_v26  ;;  %v2669_v12 = vld [vmem:[#allocation11] sm:$0xff]   ;;  %v2670_v26 = vld [vmem:[#allocation11 + $0x8] sm:$0xff]  }
 0xae1   : > { %2504 = vmatprep.subr.bf16.mxu1 %v3000_v0 }
 0xae2   : > { %v2696_v27 = vpop.eup %2695 }
 0xae3   : > { %v1610_v28 = vsel %vm1153_vm5, %v2696_v27, 0.0 }
 0xae4   : > { %1611 = vadd.xlane.f32.xlu1 %v1610_v28 }
 0xae6   : > { %v2698_v29 = vpop.eup %2697 }
 0xae7   : > { %v1613_v30 = vsel %vm1153_vm5, %v2698_v29, 0.0 }
 0xae8   : > { %1614 = vadd.xlane.f32.xlu0 %v1613_v30 }
 0xaea   : > { %v2700_v31 = vpop.eup %2699 }
 0xaeb   : > { %v1616_v32 = vsel %vm1153_vm5, %v2700_v31, 0.0 }
 0xaec   : > { %1617 = vadd.xlane.f32.xlu1 %v1616_v32  ;;  %v2308_v32 = vld [vmem:[%s3755_s16 + $0x2] ss:$0 sm:$0xff] }
 0xafd   : > { %1723 = vrot.lane.b32.xlu1 %v3537_v45, %s3004_s17 }
 0xafe   : > { %1769 = vrot.lane.b32.xlu0 %v3548_v48, %s3004_s17  ;;  %s3756_s17 = sld [smem:[#allocation25_spill]] }
 0xb04   : > { %v2667_v55 = vld [vmem:[%s3756_s17] sm:$0xff]   ;;  %v2668_v56 = vld [vmem:[%s3756_s17 + $0x8] sm:$0xff]  }
 0xb0c   : > { %v1609_v33 = vpop.xlane.xlu0 %1608 }
 0xb0d   : > { %2701 = vrcp.f32 %v1609_v33 }
 0xb17   : > { %v2702_v34 = vpop.eup %2701 }
 0xb18   : > { %v1623_v35 = vmul.f32 %v2702_v34, %v2694_v3  ;;  %v2309_v34 = vld [vmem:[%s3755_s16 + $0x3] ss:$0 sm:$0xff] }
 0xb1a   : > { %v1627_v36 = vpack.c.bf16 %v1623_v35, %v1623_v35 }
 0xb1c   : > { %2489 = vmatmul.mubr.msk.bf16.vlgmr.msra.gmra.mrb[28].mxu0 %vm1153_vm5, %v1627_v36 }
 0xb1d   : > { %2500 = vmatprep.mubr.msk.bf16.mxu0 %vm3001_vm0, %v3000_v0 }
 0xb71   : > { %v1612_v37 = vpop.xlane.xlu1 %1611 }
 0xb72   : > { %2703 = vrcp.f32 %v1612_v37 }
 0xb75   : > { %v1615_v38 = vpop.xlane.xlu0 %1614 }
 0xb76   : > { %2705 = vrcp.f32 %v1615_v38  ;;  %v2673_v38 = vld [vmem:[%s3758_s1 + $0x10] sm:$0xff]  }
 0xb79   : > { %v1618_v39 = vpop.xlane.xlu1 %1617  ;;  %v1770_v46 = vpop.permute.xlu0 %1769 }
 0xb7a   : > { %2707 = vrcp.f32 %v1618_v39  ;;  %v2674_v39 = vld [vmem:[%s3758_s1 + $0x18] sm:$0xff]  }
 0xb7c   : > { %v2704_v40 = vpop.eup %2703 }
 0xb7d   : > { %v1624_v41 = vmul.f32 %v2704_v40, %v2696_v27  ;;  %v1724_v42 = vpop.permute.xlu1 %1723  ;;  %v2672_v27 = vld [vmem:[%s3758_s1 + $0x8] sm:$0xff]   ;;  %v2310_v40 = vld [vmem:[#allocation13] ss:$0 sm:$0xff] }
 0xb7e   : > { %2499 = vmatpush3.bf16.msra.mxu0 %v1724_v42 }
 0xb7f   : > { %v1628_v43 = vpack.c.bf16 %v1624_v41, %v1624_v41  ;;  %2510 = vmatprep.subr.bf16.mxu0 %v3000_v0 }
 0xb80   : > { %v2706_v44 = vpop.eup %2705 }
 0xb81   : > { %v1625_v45 = vmul.f32 %v2706_v44, %v2698_v29  ;;  %2495 = vmatmul.mubr.msk.bf16.vlgmr.msra.gmra.mrb[36].mxu1 %vm1153_vm5, %v1628_v43 }
 0xb82   : > { %2505 = vmatpush3.bf16.msra.mxu1 %v1770_v46  ;;  %2506 = vmatprep.mubr.msk.bf16.mxu1 %vm3001_vm0, %v3000_v0 }
 0xb83   : > { %v1629_v47 = vpack.c.bf16 %v1625_v45, %v1625_v45  ;;  %2518 = vmatprep.subr.bf16.mxu1 %v3000_v0 }
 0xb84   : > { %v2708_v48 = vpop.eup %2707 }
 0xb85   : > { %v1626_v49 = vmul.f32 %v2708_v48, %v2700_v31  ;;  %2501 = vmatmul.mubr.msk.bf16.vlgmr.msra.gmra.mrb[32].mxu0 %vm1153_vm5, %v1629_v47  ;;  %v2314_v48 = vld [vmem:[%s3759_s27] ss:$0 sm:$0xff] }
 0xb86   : > { %2514 = vmatprep.mubr.msk.bf16.mxu0 %vm3001_vm0, %v3000_v0  ;;  %2511 = vmatpush3.bf16.msra.mxu0 %v2667_v55 }
 0xb87   : > { %v1630_v50 = vpack.c.bf16 %v1626_v49, %v1626_v49  ;;  %2512 = vmatprep.subr.bf16.mxu0 %v3000_v0 }
 0xb89   : > { %2507 = vmatmul.mubr.msk.bf16.vlgmr.msra.gmra.mrb[40].mxu1 %vm1153_vm5, %v1630_v50 }
 0xb8a   : > { %2522 = vmatprep.mubr.msk.bf16.mxu1 %vm3001_vm0, %v3000_v0  ;;  %2513 = vmatpush3.bf16.msra.mxu0 %v2668_v56 }
 0xb8b   : > { %2526 = vmatprep.subr.bf16.mxu0 %v3000_v0  ;;  %2519 = vmatpush3.bf16.msra.mxu1 %v2669_v12 }
 0xb8c   : > { %2520 = vmatprep.subr.bf16.mxu1 %v3000_v0 }
 0xb8f   : > { %2521 = vmatpush3.bf16.msra.mxu1 %v2670_v26 }
 0xbef   : > { %v1671_v51 = vpop.f32.mrb[28].mxu0 }
 0xbf0   : > { %v2490_v52 = vpop.f32.mrb[29].mxu0 }
 0xbf1   : > { %v1674_v53 = vpop.f32.mrb[30].mxu0 }
 0xbf2   : > { %v2491_v54 = vpop.f32.mrb[31].mxu0 }
 0xc54   : > { %v1717_v57 = vpop.f32.mrb[36].mxu1 }
 0xc55   : > { %1816 = vrot.lane.b32.xlu1 %v1717_v57, %s3008_s26  ;;  %v2496_v58 = vpop.f32.mrb[37].mxu1 }
 0xc56   : > { %v1720_v59 = vpop.f32.mrb[38].mxu1 }
 0xc57   : > { %v2497_v60 = vpop.f32.mrb[39].mxu1 }
 0xc58   : > { %v1763_v61 = vpop.f32.mrb[32].mxu0 }
 0xc59   : > { %1820 = vrot.lane.b32.xlu0 %v1763_v61, %s3009_s23  ;;  %v2502_v62 = vpop.f32.mrb[33].mxu0  ;;  %s2323_s23 = sshll.u32 %s3113_s24, 6  ;;  %s3011_s24 = smov [#allocation14]  }
 0xc5a   : > { %v1766_v63 = vpop.f32.mrb[34].mxu0 }
 0xc5b   : > { %v2503_v1 = vpop.f32.mrb[35].mxu0 }
 0xc5c   : > { %v1809_v2 = vpop.f32.mrb[40].mxu1  ;;  %v2320_v1 = vld [vmem:[%s3755_s16 + $0x4] ss:$0 sm:$0xff] }
 0xc5d   : > { %1824 = vrot.lane.b32.xlu1 %v1809_v2, %s3757_s29  ;;  %v2508_v4 = vpop.f32.mrb[41].mxu1  ;;  %s2915_s29 = sshll.u32 %s3011_s24, 4  ;;  %s2916_s29 = int_to_ptr.vmem [resolvable:$false] %s2915_s29 }
 0xc5e   : > { %v1812_v5 = vpop.f32.mrb[42].mxu1  ;;  %v2321_v4 = vld [vmem:[%s3755_s16 + $0x5] ss:$0 sm:$0xff]  ;;  %s2917_s26 = scalar_lea.vmem %s2916_s29, 128  ;;  %p2918_p3 = scmp.lt.s32.totalorder %s3655_s5, %s2916_s29 }
 0xc5f   : > { %v2509_v6 = vpop.f32.mrb[43].mxu1  ;;  %p2919_p2 = scmp.lt.s32.totalorder %s2917_s26, %s2911_s9 }
 0xc61   : > { %p2920_p0 = por %p2919_p2, %p2918_p3 }
 0xc63   : > { %p2921_p4 = pnand %p2920_p0, %p2914_p1 }
 0xcc7   : > { %v1817_v7 = vpop.permute.xlu1 %1816 }
 0xcc8   : > { %v1827_v9 = vsel %vm708_vm2, %v1671_v51, %v1817_v7 }
 0xccb   : > { %v1821_v8 = vpop.permute.xlu0 %1820 }
 0xccc   : > { %v1828_v10 = vsel %vm1153_vm5, %v1827_v9, %v1821_v8 }
 0xccf   : > { %v1825_v11 = vpop.permute.xlu1 %1824 }
 0xcd0   : > { %v1829_v14 = vsel %vm1155_vm6, %v1828_v10, %v1825_v11 }
 0xcd1   : > { %v1830_v15 = vpack.c.bf16 %v1829_v14, %v1829_v14 }
 0xcd3   : > { %2515 = vmatmul.mubr.msk.bf16.vlgmr.msra.gmra.mrb[36].mxu0 %vm639_vm1, %v1830_v15 }
 0xcd4   : > { %2534 = vmatprep.mubr.msk.bf16.mxu0 %vm3001_vm0, %v3000_v0 }
 0xda6   : > { %v1884_v3 = vpop.f32.mrb[36].mxu0 }
 0xda7   : > { %v1885_v17 = vadd.f32 %v1884_v3, %v3517_v13  ;;  %v2516_v18 = vpop.f32.mrb[37].mxu0  ;;  %v2671_v13 = vld [vmem:[%s3758_s1] sm:$0xff]   ;;  %s3761_s1 = sld [smem:[#allocation29_spill]] }
 0xda8   : > { %v1887_v19 = vpop.f32.mrb[38].mxu0  ;;  %2527 = vmatpush3.bf16.msra.mxu0 %v2671_v13 }
 0xda9   : > { %v2517_v20 = vpop.f32.mrb[39].mxu0  ;;  %v1892_v21 = vsel %vm639_vm1, %v1885_v17, 0.0  ;;  %2528 = vmatprep.subr.bf16.mxu0 %v3000_v0 }
 0xdaa   : > { %1893 = vadd.xlane.f32.xlu0 %v1892_v21 }
 0xdac   : > { %2529 = vmatpush3.bf16.msra.mxu0 %v2672_v27 }
 0xdad   : > { %2530 = vmatprep.subr.bf16.mxu0 %v3000_v0  ;;  %s3653_s2 = scalar_lea.hbm %s3761_s1, %s2323_s23 }
 0xdb0   : > { %2531 = vmatpush3.bf16.msra.mxu0 %v2673_v38 }
 0xdb1   : > { %2532 = vmatprep.subr.bf16.mxu0 %v3000_v0 }
 0xdb4   : > { %2533 = vmatpush3.bf16.msra.mxu0 %v2674_v39 }
 0xe37   : > { %v1894_v22 = vpop.xlane.xlu0 %1893 }
 0xe38   : > { %v1895_v23 = vmul.f32 0.03125, %v1894_v22 }
 0xe3a   : > { %v1896_v24 = vsub.f32 %v1885_v17, %v1895_v23 }
 0xe3c   : > { %v1897_v16 = vmul.f32 %v1896_v24, %v1896_v24 }
 0xe3e   : > { %v1898_v25 = vsel %vm639_vm1, %v1897_v16, 0.0 }
 0xe3f   : > { %1899 = vadd.xlane.f32.xlu1 %v1898_v25 }
 0xecc   : > { %v1900_v28 = vpop.xlane.xlu1 %1899 }
 0xecd   : > { %v1901_v29 = vmul.f32 0.03125, %v1900_v28 }
 0xecf   : > { %v1902_v30 = vadd.f32 1e-05, %v1901_v29 }
 0xed1   : > { %2709 = vrsqrt.f32 %v1902_v30 }
 0xedb   : > { %v2710_v31 = vpop.eup %2709 }
 0xedc   : > { %v1904_v33 = vmul.f32 %v2710_v31, %v1896_v24 }
 0xede   : > { %v1909_v35 = vmul.f32 %v2308_v32, %v1904_v33 }
 0xee0   : > { %v1914_v36 = vadd.f32 %v2309_v34, %v1909_v35 }
 0xee2   : > { %v1915_v37 = vpack.c.bf16 %v1914_v36, %v1914_v36 }
 0xee4   : > { %2523 = vmatmul.mubr.msk.bf16.vlgmr.msra.gmra.mrb[44].mxu1 %vm639_vm1, %v1915_v37 }
 0xfb7   : > { %v1976_v41 = vpop.f32.mrb[44].mxu1 }
 0xfb8   : > { %v1977_v42 = vadd.f32 %v2310_v40, %v1976_v41  ;;  %v2524_v43 = vpop.f32.mrb[45].mxu1 }
 0xfb9   : > { %v1979_v44 = vpop.f32.mrb[46].mxu1 }
 0xfba   : > { %v1982_v45 = vmax.f32 %v1977_v42, 0.0  ;;  %v2525_v46 = vpop.f32.mrb[47].mxu1 }
 0xfbc   : > { %v1983_v47 = vpack.c.bf16 %v1982_v45, %v1982_v45 }
 0xfbe   : > { %2535 = vmatmul.mubr.msk.bf16.vlgmr.msra.gmra.mrb[40].mxu0 %vm2023_vm7, %v1983_v47 }
0x1091   : > { %v2061_v0 = vpop.f32.mrb[40].mxu0 }
0x1092   : > { %v2062_v49 = vadd.f32 %v2314_v48, %v2061_v0  ;;  %v2536_v50 = vpop.f32.mrb[41].mxu0 }
0x1093   : > { %v2064_v51 = vpop.f32.mrb[42].mxu0 }
0x1094   : > { %v2537_v52 = vpop.f32.mrb[43].mxu0  ;;  %v2067_v53 = vadd.f32 %v2062_v49, %v1914_v36 }
0x1096   : > { %v2070_v54 = vsel %vm639_vm1, %v2067_v53, 0.0 }
0x1097   : > { %2071 = vadd.xlane.f32.xlu0 %v2070_v54 }
0x1124   : > { %v2072_v55 = vpop.xlane.xlu0 %2071 }
0x1125   : > { %v2073_v56 = vmul.f32 0.03125, %v2072_v55 }
0x1127   : > { %v2074_v57 = vsub.f32 %v2067_v53, %v2073_v56 }
0x1129   : > { %v2075_v58 = vmul.f32 %v2074_v57, %v2074_v57 }
0x112b   : > { %v2076_v59 = vsel %vm639_vm1, %v2075_v58, 0.0 }
0x112c   : > { %2077 = vadd.xlane.f32.xlu0 %v2076_v59 }
0x11b9   : > { %v2078_v60 = vpop.xlane.xlu0 %2077 }
0x11ba   : > { %v2079_v61 = vmul.f32 0.03125, %v2078_v60 }
0x11bc   : > { %v2080_v62 = vadd.f32 1e-05, %v2079_v61 }
0x11be   : > { %2711 = vrsqrt.f32 %v2080_v62 }
0x11c8   : > { %v2712_v63 = vpop.eup %2711 }
0x11c9   : > { %v2082_v2 = vmul.f32 %v2712_v63, %v2074_v57 }
0x11cb   : > { %v2087_v5 = vmul.f32 %v2320_v1, %v2082_v2 }
0x11cd   : > { %v2092_v6 = vadd.f32 %v2321_v4, %v2087_v5 }
0x11cf   : > { %v2093_v7 = vpack.c.bf16 %v2092_v6, %v2092_v6 }
0x11d1   : > { %2095 = vst.msk [vmem:[%s605_s13] sm:$0xf] %vm2094_vm8, %v2093_v7 }
0x11d2   : > { %2924 = shalt.err (!%p2921_p4)
}
0x11d3   : > { %s2925_s0 = scalar_lea.hbm %s3653_s2, 64  ;;  %s2929_s25 = scalar_lea.hbm %s3761_s1, 128 }
0x11d4   : > { %p2926_p10 = scmp.ne.s32.totalorder %s3653_s2, %s2925_s0  ;;  %p2930_p5 = scmp.lt.u32.totalorder %s3653_s2, %s3761_s1 }
0x11d5   : > { %p2931_p7 = scmp.lt.u32.totalorder %s2929_s25, %s2925_s0  ;;  %p2933_p9 = scmp.lt.u32.totalorder %s2925_s0, %s3653_s2 }
0x11d6   : > { %p2927_p11 = pnand %p2926_p10, %p3762_p12 }
0x11d7   : > { %p2932_p6 = por %p2931_p7, %p2930_p5 }
0x11d8   : > { %p2928_p8 = pneg %p2927_p11 }
0x11d9   : > { %p2934_p13 = por %p2933_p9, %p2932_p6 }
0x11db   : > { %p2935_p1 = pnand %p2934_p13, %p2928_p8 }
0x11dd   : > { %2938 = shalt.err (!%p2935_p1)
}
0x11de   : > { %2564 = dma.vmem_to_hbm [thread:$0]  (%p3762_p12), %s3655_s5, 64, %s3653_s2, %s2097_s22  }
0x11df PF: > { %s2122_s9 = sand.u32 1, %s2977_s18   ;;  %p3763_p3 = scmp.ne.s32.totalorder %s3742_s14, 0 }
0x11e0   : > { %p3764_p2 = scmp.ge.s32.totalorder %s2989_s21, 2  ;;  %s2123_s24 = scalar_lea.sflag [#allocation4], %s2122_s9 }
0x11e2   : > { %p2590_p0 = pnand %p3764_p2, %p3763_p3 }
0x11e4   : > { %2972 = dma.done.wait (!%p2590_p0), %s2123_s24, 64  }
0x11e5   : > { %2974 = vsyncadd (!%p2590_p0), %s2123_s24, 4294967232  ;;  %p31_p4 = scmp.ge.s32.totalorder %s3277_s28, 4   ;;  %s3765_s18 = smov %s2981_s19 }
0x11e6   : > { %s3766_s19 = smov %s2985_s20  ;;  %s3767_s20 = smov %s3288_s15 }
0x11e7   : > { %s3768_s21 = smov %s3277_s28  ;;  %33 = sbr.rel (!%p31_p4) target bundleno = 19 (0x13), region = 152 }
0x11ee   :  { %2128 = vsyncpa [#allocation3], 1 }
0x11ef   :  { %2130 = vsyncpa [#allocation3 + $0x1], 1 }
0x11f0   :  { %2131 = vsyncpa [#allocation6], 1 }
0x11f1   :  { %2132 = vsyncpa [#allocation9], 1 }
0x11f2   :  { %2133 = vsyncpa [#allocation12], 1 }
0x11f3   :  { %2134 = vsyncpa [#allocation4], 1 }
0x11f4   :  { %2136 = vsyncpa [#allocation4 + $0x1], 1 }

</bundles_post_ra>
